<compile_context>
chip_gen: v7x
topology: tpu7x:2x2x1
jax: 0.10.0
libtpu: 0.0.40
codegen_flags: <defaults>
</compile_context>

<pallas_src>
import jax
import jax.numpy as jnp
from jax.experimental import pallas as pl
from jax.experimental.pallas import tpu as pltpu


def residual_coupling_forward(x, x_mask, p):
    """Forward (reverse=False) of ResidualCouplingLayer.

    x:      (B, channels, T) float32
    x_mask: (B, 1, T) float32 (0/1)
    p:      parameter dict in PyTorch Conv1d layout (see __main__).
    Returns (y, logdet) with y.shape == x.shape, logdet.shape == (B,).
    """
    B, channels, T = x.shape
    half = channels // 2
    hidden = p["hidden_channels"]
    n_layers = p["n_layers"]
    K = p["kernel_size"]
    dr = p["dilation_rate"]
    assert K % 2 == 1, "kernel_size must be odd (matches the WN assert)"
    f32 = jnp.float32
    bf16 = jnp.bfloat16

    # All tap offsets used by the dilated convs ("same" padding keeps T fixed).
    all_offsets = sorted({(dr ** i) * (k - (K - 1) // 2)
                          for i in range(n_layers) for k in range(K)})
    assert max(abs(o) for o in all_offsets) < T, "receptive-field offset exceeds T"

    # ---- pack weights: matmul dims last, MXU operands bf16, biases f32 ----
    pre_w = p["pre_w"][:, :, 0].astype(bf16)                            # (hidden, half)
    pre_b = p["pre_b"].astype(f32)[:, None]                             # (hidden, 1)

    # (L, 2h, h, K) -> (L, 2h, K, h) -> (L, 2h, K*h): one deep matmul per layer.
    in_w = jnp.stack(p["in_w"]).astype(f32)
    in_w_pack = in_w.transpose(0, 1, 3, 2).reshape(
        n_layers, 2 * hidden, K * hidden).astype(bf16)                  # (L, 2h, K*h)
    in_b = jnp.stack(p["in_b"]).astype(f32)[:, :, None]                 # (L, 2h, 1)

    # res/skip 1x1 convs: layers 0..L-2 produce (2h); the last layer is skip-only (h).
    if n_layers > 1:
        rs_w = jnp.stack([p["res_skip_w"][i][:, :, 0]
                          for i in range(n_layers - 1)]).astype(bf16)   # (L-1, 2h, h)
        rs_b = jnp.stack([p["res_skip_b"][i]
                          for i in range(n_layers - 1)]).astype(f32)[:, :, None]
    else:  # non-empty dummy (never indexed when n_layers == 1)
        rs_w = jnp.zeros((1, 2 * hidden, hidden), bf16)
        rs_b = jnp.zeros((1, 2 * hidden, 1), f32)
    last_w = p["res_skip_w"][n_layers - 1][:, :, 0].astype(bf16)        # (hidden, hidden)
    last_b = p["res_skip_b"][n_layers - 1].astype(f32)[:, None]         # (hidden, 1)

    post_w = p["post_w"][:, :, 0]
    post_b = p["post_b"]
    post_w_k = jnp.stack([post_w[:half], post_w[half:]]).astype(bf16)   # (2, half, hidden)
    post_b_k = jnp.stack([post_b[:half], post_b[half:]]).astype(f32)[:, :, None]

    # ---- fused kernel: one batch element per grid step, T lane-dense ----
    def kernel(x_ref, mask_ref,
               pre_w_ref, pre_b_ref, in_w_ref, in_b_ref,
               rs_w_ref, rs_b_ref, last_w_ref, last_b_ref,
               post_w_ref, post_b_ref,
               y_ref, ld_ref):
        x_b = x_ref[0]                           # (channels, T) f32
        x0 = x_b[:half]                          # (half, T)
        x1 = x_b[half:]                          # (half, T)
        mask = mask_ref[0]                       # (1, T) f32

        # hoisted broadcasts (JAX does not CSE broadcast_in_dim inside the unrolled loop)
        mask_h = jnp.broadcast_to(mask, (hidden, T))
        mask_half = jnp.broadcast_to(mask, (half, T))

        # boundary masks reproducing the conv zero-padding (t + off outside [0, T) -> 0)
        t_idx = jax.lax.broadcasted_iota(jnp.int32, (1, T), 1)
        bmask = {o: ((t_idx + o >= 0) & (t_idx + o < T)).astype(f32)
                 for o in all_offsets if o != 0}

        def tap(h, off):
            # out[:, t] = h[:, t + off], zero where t + off is outside [0, T)
            if off == 0:
                return h
            rolled = pltpu.roll(h, shift=(-off) % T, axis=1)   # XLU lane rotate (jnp.roll semantics)
            return rolled * bmask[off]

        # pre 1x1 conv (MXU, bf16 operands, f32 accumulation) -> mask
        h = jnp.dot(pre_w_ref[...], x0.astype(bf16), preferred_element_type=f32)
        h = (h + pre_b_ref[...]) * mask_h                       # (hidden, T) f32

        skip = jnp.zeros((hidden, T), f32)
        # TODO(synk): for large n_layers convert this static unroll to lax.fori_loop (dr == 1 case).
        for i in range(n_layers):
            d = dr ** i
            # stack K dilated taps -> single deep-contraction matmul (contraction depth K*hidden)
            taps = [tap(h, d * (k - (K - 1) // 2)) for k in range(K)]
            stacked = jnp.concatenate(taps, axis=0).astype(bf16)        # (K*hidden, T)
            acc = jnp.dot(in_w_ref[i], stacked, preferred_element_type=f32) + in_b_ref[i]
            # gated activation on the EUP, kept in f32
            acts = jnp.tanh(acc[:hidden]) * jax.nn.sigmoid(acc[hidden:])
            # TODO(synk): dropout for p_dropout > 0 omitted (module default p_dropout=0 / eval mode).
            acts_bf = acts.astype(bf16)
            if i < n_layers - 1:
                rs = jnp.dot(rs_w_ref[i], acts_bf, preferred_element_type=f32) + rs_b_ref[i]
                h = (h + rs[:hidden]) * mask_h
                skip = skip + rs[hidden:]
            else:
                skip = skip + (jnp.dot(last_w_ref[...], acts_bf,
                                       preferred_element_type=f32) + last_b_ref[...])
        skip = (skip * mask_h).astype(bf16)

        # post 1x1 conv split into mean / log-scale halves
        m = (jnp.dot(post_w_ref[0], skip, preferred_element_type=f32)
             + post_b_ref[0]) * mask_half
        logs = (jnp.dot(post_w_ref[1], skip, preferred_element_type=f32)
                + post_b_ref[1]) * mask_half

        y1 = m + x1 * jnp.exp(logs) * mask_half
        # full y written in-kernel (x0 passthrough is already resident in VMEM)
        y_ref[0] = jnp.concatenate([x0, y1], axis=0).astype(y_ref.dtype)
        # logdet partial: channel-reduced in-kernel, wrapper only sums the tiny (1, T) remainder
        ld_ref[0] = jnp.sum(logs, axis=0, keepdims=True)

    def batch_spec(c):
        def idx(b):
            return (b, 0, 0)
        return pl.BlockSpec((1, c, T), idx)

    def full_spec(arr):
        n = arr.ndim
        def idx(b):
            return (0,) * n
        return pl.BlockSpec(arr.shape, idx)

    y, ld_part = pl.pallas_call(
        kernel,
        out_shape=(jax.ShapeDtypeStruct((B, channels, T), x.dtype),
                   jax.ShapeDtypeStruct((B, 1, T), jnp.float32)),
        grid_spec=pltpu.PrefetchScalarGridSpec(
            num_scalar_prefetch=0,
            grid=(B,),
            in_specs=[
                batch_spec(channels), batch_spec(1),
                full_spec(pre_w), full_spec(pre_b),
                full_spec(in_w_pack), full_spec(in_b),
                full_spec(rs_w), full_spec(rs_b),
                full_spec(last_w), full_spec(last_b),
                full_spec(post_w_k), full_spec(post_b_k),
            ],
            out_specs=[batch_spec(channels), batch_spec(1)],
        ),
        compiler_params=pltpu.CompilerParams(
            dimension_semantics=("parallel",),
            vmem_limit_bytes=64 * 1024 * 1024,
        ),
    )(x, x_mask.astype(f32), pre_w, pre_b, in_w_pack, in_b,
      rs_w, rs_b, last_w, last_b, post_w_k, post_b_k)

    # TODO(synk): reverse=True ((x1-m)*exp(-logs), no logdet), mean_only=True and gin_channels
    # conditioning are trivial variants of the same kernel and are not wired up here.
    # TODO(synk): for B=1 / very long T, add a second "parallel" grid axis over T tiles (halo copy)
    # so both v7x TensorCores are used.
    logdet = jnp.sum(ld_part, axis=(1, 2))
    return y, logdet


# ---------------- pure-JAX reference (mirrors the PyTorch module math) ----------------
def _conv1d(x, w, b, dilation=1, padding=0):
    y = jax.lax.conv_general_dilated(
        x, w, window_strides=(1,), padding=[(padding, padding)],
        rhs_dilation=(dilation,), dimension_numbers=("NCH", "OIH", "NCH"),
        precision=jax.lax.Precision.HIGHEST)
    return y + b[None, :, None]


def ref_forward(x, x_mask, p):
    half = x.shape[1] // 2
    hidden = p["hidden_channels"]
    n_layers = p["n_layers"]
    K = p["kernel_size"]
    dr = p["dilation_rate"]
    x0, x1 = x[:, :half], x[:, half:]
    h = _conv1d(x0, p["pre_w"], p["pre_b"]) * x_mask
    output = jnp.zeros_like(h)
    for i in range(n_layers):
        d = dr ** i
        pad = (K * d - d) // 2
        x_in = _conv1d(h, p["in_w"][i], p["in_b"][i], dilation=d, padding=pad)
        acts = jnp.tanh(x_in[:, :hidden]) * jax.nn.sigmoid(x_in[:, hidden:])
        rs = _conv1d(acts, p["res_skip_w"][i], p["res_skip_b"][i])
        if i < n_layers - 1:
            h = (h + rs[:, :hidden]) * x_mask
            output = output + rs[:, hidden:]
        else:
            output = output + rs
    output = output * x_mask
    stats = _conv1d(output, p["post_w"], p["post_b"]) * x_mask
    m, logs = stats[:, :half], stats[:, half:]
    y1 = m + x1 * jnp.exp(logs) * x_mask
    y = jnp.concatenate([x0, y1], axis=1)
    logdet = jnp.sum(logs, axis=(1, 2))
    return y, logdet


if __name__ == "__main__":
    B, channels, T = 2, 16, 128
    hidden, K, n_layers = 32, 5, 4
    half = channels // 2

    key = jax.random.PRNGKey(0)
    kit = iter(list(jax.random.split(key, 32)))

    def nrm(shape, scale=0.1):
        return scale * jax.random.normal(next(kit), shape, dtype=jnp.float32)

    # Effective (weight-normed) weights in PyTorch Conv1d layout (Cout, Cin, K).
    params = {
        "hidden_channels": hidden, "kernel_size": K,
        "dilation_rate": 1, "n_layers": n_layers,
        "pre_w": nrm((hidden, half, 1)),
        "pre_b": nrm((hidden,)),
        "in_w": [nrm((2 * hidden, hidden, K)) for _ in range(n_layers)],
        "in_b": [nrm((2 * hidden,)) for _ in range(n_layers)],
        "res_skip_w": [nrm(((2 * hidden) if i < n_layers - 1 else hidden, hidden, 1))
                       for i in range(n_layers)],
        "res_skip_b": [nrm(((2 * hidden) if i < n_layers - 1 else hidden,))
                       for i in range(n_layers)],
        # module init: post conv weight & bias are zero-initialized
        "post_w": jnp.zeros((channels, hidden, 1), jnp.float32),
        "post_b": jnp.zeros((channels,), jnp.float32),
    }

    x = jax.random.normal(next(kit), (B, channels, T), dtype=jnp.float32)
    lengths = jnp.array([T, 96])
    x_mask = (jnp.arange(T)[None, None, :] < lengths[:, None, None]).astype(jnp.float32)

    # Kernel uses bf16 MXU operands with f32 accumulation; the reference is full-f32 HIGHEST
    # precision, so tolerances are set to bf16-level error.
    Y_TOL, LD_TOL = 3e-2, 5e-1

    # 1) module-default init (zero post conv): y1 == x1*mask and logdet == 0 exactly
    y_k, ld_k = residual_coupling_forward(x, x_mask, params)
    jax.block_until_ready((y_k, ld_k))
    y_r, ld_r = ref_forward(x, x_mask, params)
    assert y_k.shape == x.shape and y_k.dtype == x.dtype and ld_k.shape == (B,)
    assert float(jnp.max(jnp.abs(y_k - y_r))) < 1e-5
    assert float(jnp.max(jnp.abs(ld_k - ld_r))) < 1e-5

    # 2) non-zero post conv weights: exercises the full affine / logdet path
    params2 = dict(params)
    params2["post_w"] = nrm((channels, hidden, 1))
    params2["post_b"] = nrm((channels,))
    y_k2, ld_k2 = residual_coupling_forward(x, x_mask, params2)
    jax.block_until_ready((y_k2, ld_k2))
    y_r2, ld_r2 = ref_forward(x, x_mask, params2)
    assert float(jnp.max(jnp.abs(y_k2 - y_r2))) < Y_TOL
    assert float(jnp.max(jnp.abs(ld_k2 - ld_r2))) < LD_TOL

    # 3) dilation_rate = 2: exercises different tap offsets (rolls/masks) per layer
    params3 = dict(params2)
    params3["dilation_rate"] = 2
    y_k3, ld_k3 = residual_coupling_forward(x, x_mask, params3)
    jax.block_until_ready((y_k3, ld_k3))
    y_r3, ld_r3 = ref_forward(x, x_mask, params3)
    assert float(jnp.max(jnp.abs(y_k3 - y_r3))) < Y_TOL
    assert float(jnp.max(jnp.abs(ld_k3 - ld_r3))) < LD_TOL

    print("KERNEL_OK")
</pallas_src>

<mosaic_0001>
module attributes {stable_mosaic.version = 11 : i64} {
  func.func @kernel(%arg0: i32, %arg1: memref<1x16x128xf32, #tpu.memory_space<vmem>>, %arg2: memref<1x1x128xf32, #tpu.memory_space<vmem>>, %arg3: memref<32x8xbf16, #tpu.memory_space<vmem>>, %arg4: memref<32x1xf32, #tpu.memory_space<vmem>>, %arg5: memref<4x64x160xbf16, #tpu.memory_space<vmem>>, %arg6: memref<4x64x1xf32, #tpu.memory_space<vmem>>, %arg7: memref<3x64x32xbf16, #tpu.memory_space<vmem>>, %arg8: memref<3x64x1xf32, #tpu.memory_space<vmem>>, %arg9: memref<32x32xbf16, #tpu.memory_space<vmem>>, %arg10: memref<32x1xf32, #tpu.memory_space<vmem>>, %arg11: memref<2x8x32xbf16, #tpu.memory_space<vmem>>, %arg12: memref<2x8x1xf32, #tpu.memory_space<vmem>>, %arg13: memref<1x16x128xf32, #tpu.memory_space<vmem>>, %arg14: memref<1x1x128xf32, #tpu.memory_space<vmem>>) attributes {dimension_semantics = [#tpu.dimension_semantics<parallel>], iteration_bounds = array<i64: 2>, scalar_prefetch = 0 : i64, scratch_operands = 0 : i64, tpu.core_type = #tpu.core_type<tc>, window_params = [{transform_indices = @transform_0, window_bounds = array<i64: 1, 16, 128>}, {transform_indices = @transform_1, window_bounds = array<i64: 1, 1, 128>}, {pipeline_mode = #tpu.pipeline_mode<synchronous>, transform_indices = @transform_2, window_bounds = array<i64: 32, 8>}, {pipeline_mode = #tpu.pipeline_mode<synchronous>, transform_indices = @transform_3, window_bounds = array<i64: 32, 1>}, {pipeline_mode = #tpu.pipeline_mode<synchronous>, transform_indices = @transform_4, window_bounds = array<i64: 4, 64, 160>}, {pipeline_mode = #tpu.pipeline_mode<synchronous>, transform_indices = @transform_5, window_bounds = array<i64: 4, 64, 1>}, {pipeline_mode = #tpu.pipeline_mode<synchronous>, transform_indices = @transform_6, window_bounds = array<i64: 3, 64, 32>}, {pipeline_mode = #tpu.pipeline_mode<synchronous>, transform_indices = @transform_7, window_bounds = array<i64: 3, 64, 1>}, {pipeline_mode = #tpu.pipeline_mode<synchronous>, transform_indices = @transform_8, window_bounds = array<i64: 32, 32>}, {pipeline_mode = #tpu.pipeline_mode<synchronous>, transform_indices = @transform_9, window_bounds = array<i64: 32, 1>}, {pipeline_mode = #tpu.pipeline_mode<synchronous>, transform_indices = @transform_10, window_bounds = array<i64: 2, 8, 32>}, {pipeline_mode = #tpu.pipeline_mode<synchronous>, transform_indices = @transform_11, window_bounds = array<i64: 2, 8, 1>}, {transform_indices = @transform_12, window_bounds = array<i64: 1, 16, 128>}, {transform_indices = @transform_13, window_bounds = array<i64: 1, 1, 128>}]} {
    %c0 = arith.constant 0 : index
    %c0_0 = arith.constant 0 : index
    %c0_1 = arith.constant 0 : index
    %0 = vector.load %arg1[%c0, %c0_0, %c0_1] : memref<1x16x128xf32, #tpu.memory_space<vmem>>, vector<1x16x128xf32>
    %1 = vector.shape_cast %0 : vector<1x16x128xf32> to vector<16x128xf32>
    %2 = vector.extract_strided_slice %1 {offsets = [0, 0], sizes = [8, 128], strides = [1, 1]} : vector<16x128xf32> to vector<8x128xf32>
    %3 = vector.extract_strided_slice %1 {offsets = [8, 0], sizes = [8, 128], strides = [1, 1]} : vector<16x128xf32> to vector<8x128xf32>
    %c0_2 = arith.constant 0 : index
    %c0_3 = arith.constant 0 : index
    %c0_4 = arith.constant 0 : index
    %4 = vector.load %arg2[%c0_2, %c0_3, %c0_4] : memref<1x1x128xf32, #tpu.memory_space<vmem>>, vector<1x1x128xf32>
    %5 = vector.shape_cast %4 : vector<1x1x128xf32> to vector<1x128xf32>
    %6 = vector.shape_cast %5 : vector<1x128xf32> to vector<1x128xf32>
    %7 = vector.broadcast %6 : vector<1x128xf32> to vector<32x128xf32>
    %8 = vector.shape_cast %5 : vector<1x128xf32> to vector<1x128xf32>
    %9 = vector.broadcast %8 : vector<1x128xf32> to vector<8x128xf32>
    %10 = tpu.iota {dimensions = array<i32: 1>} : vector<1x128xi32>
    %c-2_i32 = arith.constant -2 : i32
    %11 = vector.broadcast %c-2_i32 : i32 to vector<1x128xi32>
    %12 = arith.addi %10, %11 : vector<1x128xi32>
    %c0_i32 = arith.constant 0 : i32
    %13 = vector.broadcast %c0_i32 : i32 to vector<1x128xi32>
    %14 = arith.cmpi sge, %12, %13 : vector<1x128xi32>
    %c-2_i32_5 = arith.constant -2 : i32
    %15 = vector.broadcast %c-2_i32_5 : i32 to vector<1x128xi32>
    %16 = arith.addi %10, %15 : vector<1x128xi32>
    %c128_i32 = arith.constant 128 : i32
    %17 = vector.broadcast %c128_i32 : i32 to vector<1x128xi32>
    %18 = arith.cmpi slt, %16, %17 : vector<1x128xi32>
    %19 = arith.andi %14, %18 : vector<1x128xi1>
    %20 = arith.extui %19 : vector<1x128xi1> to vector<1x128xi32>
    %21 = arith.sitofp %20 : vector<1x128xi32> to vector<1x128xf32>
    %c-1_i32 = arith.constant -1 : i32
    %22 = vector.broadcast %c-1_i32 : i32 to vector<1x128xi32>
    %23 = arith.addi %10, %22 : vector<1x128xi32>
    %c0_i32_6 = arith.constant 0 : i32
    %24 = vector.broadcast %c0_i32_6 : i32 to vector<1x128xi32>
    %25 = arith.cmpi sge, %23, %24 : vector<1x128xi32>
    %c-1_i32_7 = arith.constant -1 : i32
    %26 = vector.broadcast %c-1_i32_7 : i32 to vector<1x128xi32>
    %27 = arith.addi %10, %26 : vector<1x128xi32>
    %c128_i32_8 = arith.constant 128 : i32
    %28 = vector.broadcast %c128_i32_8 : i32 to vector<1x128xi32>
    %29 = arith.cmpi slt, %27, %28 : vector<1x128xi32>
    %30 = arith.andi %25, %29 : vector<1x128xi1>
    %31 = arith.extui %30 : vector<1x128xi1> to vector<1x128xi32>
    %32 = arith.sitofp %31 : vector<1x128xi32> to vector<1x128xf32>
    %c1_i32 = arith.constant 1 : i32
    %33 = vector.broadcast %c1_i32 : i32 to vector<1x128xi32>
    %34 = arith.addi %10, %33 : vector<1x128xi32>
    %c0_i32_9 = arith.constant 0 : i32
    %35 = vector.broadcast %c0_i32_9 : i32 to vector<1x128xi32>
    %36 = arith.cmpi sge, %34, %35 : vector<1x128xi32>
    %c1_i32_10 = arith.constant 1 : i32
    %37 = vector.broadcast %c1_i32_10 : i32 to vector<1x128xi32>
    %38 = arith.addi %10, %37 : vector<1x128xi32>
    %c128_i32_11 = arith.constant 128 : i32
    %39 = vector.broadcast %c128_i32_11 : i32 to vector<1x128xi32>
    %40 = arith.cmpi slt, %38, %39 : vector<1x128xi32>
    %41 = arith.andi %36, %40 : vector<1x128xi1>
    %42 = arith.extui %41 : vector<1x128xi1> to vector<1x128xi32>
    %43 = arith.sitofp %42 : vector<1x128xi32> to vector<1x128xf32>
    %c2_i32 = arith.constant 2 : i32
    %44 = vector.broadcast %c2_i32 : i32 to vector<1x128xi32>
    %45 = arith.addi %10, %44 : vector<1x128xi32>
    %c0_i32_12 = arith.constant 0 : i32
    %46 = vector.broadcast %c0_i32_12 : i32 to vector<1x128xi32>
    %47 = arith.cmpi sge, %45, %46 : vector<1x128xi32>
    %c2_i32_13 = arith.constant 2 : i32
    %48 = vector.broadcast %c2_i32_13 : i32 to vector<1x128xi32>
    %49 = arith.addi %10, %48 : vector<1x128xi32>
    %c128_i32_14 = arith.constant 128 : i32
    %50 = vector.broadcast %c128_i32_14 : i32 to vector<1x128xi32>
    %51 = arith.cmpi slt, %49, %50 : vector<1x128xi32>
    %52 = arith.andi %47, %51 : vector<1x128xi1>
    %53 = arith.extui %52 : vector<1x128xi1> to vector<1x128xi32>
    %54 = arith.sitofp %53 : vector<1x128xi32> to vector<1x128xf32>
    %c0_15 = arith.constant 0 : index
    %c0_16 = arith.constant 0 : index
    %55 = vector.load %arg3[%c0_15, %c0_16] : memref<32x8xbf16, #tpu.memory_space<vmem>>, vector<32x8xbf16>
    %56 = arith.truncf %2 : vector<8x128xf32> to vector<8x128xbf16>
    %cst = arith.constant dense<0.000000e+00> : vector<32x128xf32>
    %57 = tpu.matmul %55, %56, %cst {dimension_numbers = #tpu.dot_dimension_numbers<[1], [0], [0], [1], [0, 0, 1, 1], [], []>} : vector<32x8xbf16>, vector<8x128xbf16>, vector<32x128xf32> -> vector<32x128xf32>
    %c0_17 = arith.constant 0 : index
    %c0_18 = arith.constant 0 : index
    %58 = vector.load %arg4[%c0_17, %c0_18] : memref<32x1xf32, #tpu.memory_space<vmem>>, vector<32x1xf32>
    %59 = vector.broadcast %58 : vector<32x1xf32> to vector<32x128xf32>
    %60 = arith.addf %57, %59 : vector<32x128xf32>
    %61 = arith.mulf %60, %7 : vector<32x128xf32>
    %cst_19 = arith.constant 0.000000e+00 : f32
    %62 = vector.broadcast %cst_19 : f32 to vector<32x128xf32>
    %c2_i32_20 = arith.constant 2 : i32
    %63 = tpu.dynamic_rotate %61 by %c2_i32_20 dim 1 : vector<32x128xf32>, i32 -> vector<32x128xf32>
    %64 = vector.broadcast %21 : vector<1x128xf32> to vector<32x128xf32>
    %65 = arith.mulf %63, %64 : vector<32x128xf32>
    %c1_i32_21 = arith.constant 1 : i32
    %66 = tpu.dynamic_rotate %61 by %c1_i32_21 dim 1 : vector<32x128xf32>, i32 -> vector<32x128xf32>
    %67 = vector.broadcast %32 : vector<1x128xf32> to vector<32x128xf32>
    %68 = arith.mulf %66, %67 : vector<32x128xf32>
    %c127_i32 = arith.constant 127 : i32
    %69 = tpu.dynamic_rotate %61 by %c127_i32 dim 1 : vector<32x128xf32>, i32 -> vector<32x128xf32>
    %70 = vector.broadcast %43 : vector<1x128xf32> to vector<32x128xf32>
    %71 = arith.mulf %69, %70 : vector<32x128xf32>
    %c126_i32 = arith.constant 126 : i32
    %72 = tpu.dynamic_rotate %61 by %c126_i32 dim 1 : vector<32x128xf32>, i32 -> vector<32x128xf32>
    %73 = vector.broadcast %54 : vector<1x128xf32> to vector<32x128xf32>
    %74 = arith.mulf %72, %73 : vector<32x128xf32>
    %75 = tpu.concatenate %65, %68, %61, %71, %74 in 0 : vector<32x128xf32>, vector<32x128xf32>, vector<32x128xf32>, vector<32x128xf32>, vector<32x128xf32> -> vector<160x128xf32>
    %76 = arith.truncf %75 : vector<160x128xf32> to vector<160x128xbf16>
    %c0_22 = arith.constant 0 : index
    %c0_23 = arith.constant 0 : index
    %c0_24 = arith.constant 0 : index
    %77 = vector.load %arg5[%c0_22, %c0_23, %c0_24] : memref<4x64x160xbf16, #tpu.memory_space<vmem>>, vector<1x64x160xbf16>
    %78 = vector.shape_cast %77 : vector<1x64x160xbf16> to vector<64x160xbf16>
    %cst_25 = arith.constant dense<0.000000e+00> : vector<64x128xf32>
    %79 = tpu.matmul %78, %76, %cst_25 {dimension_numbers = #tpu.dot_dimension_numbers<[1], [0], [0], [1], [0, 0, 1, 1], [], []>} : vector<64x160xbf16>, vector<160x128xbf16>, vector<64x128xf32> -> vector<64x128xf32>
    %c0_26 = arith.constant 0 : index
    %c0_27 = arith.constant 0 : index
    %c0_28 = arith.constant 0 : index
    %80 = vector.load %arg6[%c0_26, %c0_27, %c0_28] : memref<4x64x1xf32, #tpu.memory_space<vmem>>, vector<1x64x1xf32>
    %81 = vector.shape_cast %80 : vector<1x64x1xf32> to vector<64x1xf32>
    %82 = vector.broadcast %81 : vector<64x1xf32> to vector<64x128xf32>
    %83 = arith.addf %79, %82 : vector<64x128xf32>
    %84 = vector.extract_strided_slice %83 {offsets = [0, 0], sizes = [32, 128], strides = [1, 1]} : vector<64x128xf32> to vector<32x128xf32>
    %85 = math.tanh %84 : vector<32x128xf32>
    %86 = vector.extract_strided_slice %83 {offsets = [32, 0], sizes = [32, 128], strides = [1, 1]} : vector<64x128xf32> to vector<32x128xf32>
    %87 = arith.negf %86 : vector<32x128xf32>
    %88 = math.exp %87 : vector<32x128xf32>
    %cst_29 = arith.constant 1.000000e+00 : f32
    %89 = vector.broadcast %cst_29 : f32 to vector<32x128xf32>
    %90 = arith.addf %89, %88 : vector<32x128xf32>
    %91 = arith.divf %89, %90 : vector<32x128xf32>
    %92 = arith.mulf %85, %91 : vector<32x128xf32>
    %93 = arith.truncf %92 : vector<32x128xf32> to vector<32x128xbf16>
    %c0_30 = arith.constant 0 : index
    %c0_31 = arith.constant 0 : index
    %c0_32 = arith.constant 0 : index
    %94 = vector.load %arg7[%c0_30, %c0_31, %c0_32] : memref<3x64x32xbf16, #tpu.memory_space<vmem>>, vector<1x64x32xbf16>
    %95 = vector.shape_cast %94 : vector<1x64x32xbf16> to vector<64x32xbf16>
    %cst_33 = arith.constant dense<0.000000e+00> : vector<64x128xf32>
    %96 = tpu.matmul %95, %93, %cst_33 {dimension_numbers = #tpu.dot_dimension_numbers<[1], [0], [0], [1], [0, 0, 1, 1], [], []>} : vector<64x32xbf16>, vector<32x128xbf16>, vector<64x128xf32> -> vector<64x128xf32>
    %c0_34 = arith.constant 0 : index
    %c0_35 = arith.constant 0 : index
    %c0_36 = arith.constant 0 : index
    %97 = vector.load %arg8[%c0_34, %c0_35, %c0_36] : memref<3x64x1xf32, #tpu.memory_space<vmem>>, vector<1x64x1xf32>
    %98 = vector.shape_cast %97 : vector<1x64x1xf32> to vector<64x1xf32>
    %99 = vector.broadcast %98 : vector<64x1xf32> to vector<64x128xf32>
    %100 = arith.addf %96, %99 : vector<64x128xf32>
    %101 = vector.extract_strided_slice %100 {offsets = [0, 0], sizes = [32, 128], strides = [1, 1]} : vector<64x128xf32> to vector<32x128xf32>
    %102 = arith.addf %61, %101 : vector<32x128xf32>
    %103 = arith.mulf %102, %7 : vector<32x128xf32>
    %104 = vector.extract_strided_slice %100 {offsets = [32, 0], sizes = [32, 128], strides = [1, 1]} : vector<64x128xf32> to vector<32x128xf32>
    %105 = arith.addf %62, %104 : vector<32x128xf32>
    %c2_i32_37 = arith.constant 2 : i32
    %106 = tpu.dynamic_rotate %103 by %c2_i32_37 dim 1 : vector<32x128xf32>, i32 -> vector<32x128xf32>
    %107 = vector.broadcast %21 : vector<1x128xf32> to vector<32x128xf32>
    %108 = arith.mulf %106, %107 : vector<32x128xf32>
    %c1_i32_38 = arith.constant 1 : i32
    %109 = tpu.dynamic_rotate %103 by %c1_i32_38 dim 1 : vector<32x128xf32>, i32 -> vector<32x128xf32>
    %110 = vector.broadcast %32 : vector<1x128xf32> to vector<32x128xf32>
    %111 = arith.mulf %109, %110 : vector<32x128xf32>
    %c127_i32_39 = arith.constant 127 : i32
    %112 = tpu.dynamic_rotate %103 by %c127_i32_39 dim 1 : vector<32x128xf32>, i32 -> vector<32x128xf32>
    %113 = vector.broadcast %43 : vector<1x128xf32> to vector<32x128xf32>
    %114 = arith.mulf %112, %113 : vector<32x128xf32>
    %c126_i32_40 = arith.constant 126 : i32
    %115 = tpu.dynamic_rotate %103 by %c126_i32_40 dim 1 : vector<32x128xf32>, i32 -> vector<32x128xf32>
    %116 = vector.broadcast %54 : vector<1x128xf32> to vector<32x128xf32>
    %117 = arith.mulf %115, %116 : vector<32x128xf32>
    %118 = tpu.concatenate %108, %111, %103, %114, %117 in 0 : vector<32x128xf32>, vector<32x128xf32>, vector<32x128xf32>, vector<32x128xf32>, vector<32x128xf32> -> vector<160x128xf32>
    %119 = arith.truncf %118 : vector<160x128xf32> to vector<160x128xbf16>
    %c1 = arith.constant 1 : index
    %c0_41 = arith.constant 0 : index
    %c0_42 = arith.constant 0 : index
    %120 = vector.load %arg5[%c1, %c0_41, %c0_42] : memref<4x64x160xbf16, #tpu.memory_space<vmem>>, vector<1x64x160xbf16>
    %121 = vector.shape_cast %120 : vector<1x64x160xbf16> to vector<64x160xbf16>
    %cst_43 = arith.constant dense<0.000000e+00> : vector<64x128xf32>
    %122 = tpu.matmul %121, %119, %cst_43 {dimension_numbers = #tpu.dot_dimension_numbers<[1], [0], [0], [1], [0, 0, 1, 1], [], []>} : vector<64x160xbf16>, vector<160x128xbf16>, vector<64x128xf32> -> vector<64x128xf32>
    %c1_44 = arith.constant 1 : index
    %c0_45 = arith.constant 0 : index
    %c0_46 = arith.constant 0 : index
    %123 = vector.load %arg6[%c1_44, %c0_45, %c0_46] : memref<4x64x1xf32, #tpu.memory_space<vmem>>, vector<1x64x1xf32>
    %124 = vector.shape_cast %123 : vector<1x64x1xf32> to vector<64x1xf32>
    %125 = vector.broadcast %124 : vector<64x1xf32> to vector<64x128xf32>
    %126 = arith.addf %122, %125 : vector<64x128xf32>
    %127 = vector.extract_strided_slice %126 {offsets = [0, 0], sizes = [32, 128], strides = [1, 1]} : vector<64x128xf32> to vector<32x128xf32>
    %128 = math.tanh %127 : vector<32x128xf32>
    %129 = vector.extract_strided_slice %126 {offsets = [32, 0], sizes = [32, 128], strides = [1, 1]} : vector<64x128xf32> to vector<32x128xf32>
    %130 = arith.negf %129 : vector<32x128xf32>
    %131 = math.exp %130 : vector<32x128xf32>
    %cst_47 = arith.constant 1.000000e+00 : f32
    %132 = vector.broadcast %cst_47 : f32 to vector<32x128xf32>
    %133 = arith.addf %132, %131 : vector<32x128xf32>
    %134 = arith.divf %132, %133 : vector<32x128xf32>
    %135 = arith.mulf %128, %134 : vector<32x128xf32>
    %136 = arith.truncf %135 : vector<32x128xf32> to vector<32x128xbf16>
    %c1_48 = arith.constant 1 : index
    %c0_49 = arith.constant 0 : index
    %c0_50 = arith.constant 0 : index
    %137 = vector.load %arg7[%c1_48, %c0_49, %c0_50] : memref<3x64x32xbf16, #tpu.memory_space<vmem>>, vector<1x64x32xbf16>
    %138 = vector.shape_cast %137 : vector<1x64x32xbf16> to vector<64x32xbf16>
    %cst_51 = arith.constant dense<0.000000e+00> : vector<64x128xf32>
    %139 = tpu.matmul %138, %136, %cst_51 {dimension_numbers = #tpu.dot_dimension_numbers<[1], [0], [0], [1], [0, 0, 1, 1], [], []>} : vector<64x32xbf16>, vector<32x128xbf16>, vector<64x128xf32> -> vector<64x128xf32>
    %c1_52 = arith.constant 1 : index
    %c0_53 = arith.constant 0 : index
    %c0_54 = arith.constant 0 : index
    %140 = vector.load %arg8[%c1_52, %c0_53, %c0_54] : memref<3x64x1xf32, #tpu.memory_space<vmem>>, vector<1x64x1xf32>
    %141 = vector.shape_cast %140 : vector<1x64x1xf32> to vector<64x1xf32>
    %142 = vector.broadcast %141 : vector<64x1xf32> to vector<64x128xf32>
    %143 = arith.addf %139, %142 : vector<64x128xf32>
    %144 = vector.extract_strided_slice %143 {offsets = [0, 0], sizes = [32, 128], strides = [1, 1]} : vector<64x128xf32> to vector<32x128xf32>
    %145 = arith.addf %103, %144 : vector<32x128xf32>
    %146 = arith.mulf %145, %7 : vector<32x128xf32>
    %147 = vector.extract_strided_slice %143 {offsets = [32, 0], sizes = [32, 128], strides = [1, 1]} : vector<64x128xf32> to vector<32x128xf32>
    %148 = arith.addf %105, %147 : vector<32x128xf32>
    %c2_i32_55 = arith.constant 2 : i32
    %149 = tpu.dynamic_rotate %146 by %c2_i32_55 dim 1 : vector<32x128xf32>, i32 -> vector<32x128xf32>
    %150 = vector.broadcast %21 : vector<1x128xf32> to vector<32x128xf32>
    %151 = arith.mulf %149, %150 : vector<32x128xf32>
    %c1_i32_56 = arith.constant 1 : i32
    %152 = tpu.dynamic_rotate %146 by %c1_i32_56 dim 1 : vector<32x128xf32>, i32 -> vector<32x128xf32>
    %153 = vector.broadcast %32 : vector<1x128xf32> to vector<32x128xf32>
    %154 = arith.mulf %152, %153 : vector<32x128xf32>
    %c127_i32_57 = arith.constant 127 : i32
    %155 = tpu.dynamic_rotate %146 by %c127_i32_57 dim 1 : vector<32x128xf32>, i32 -> vector<32x128xf32>
    %156 = vector.broadcast %43 : vector<1x128xf32> to vector<32x128xf32>
    %157 = arith.mulf %155, %156 : vector<32x128xf32>
    %c126_i32_58 = arith.constant 126 : i32
    %158 = tpu.dynamic_rotate %146 by %c126_i32_58 dim 1 : vector<32x128xf32>, i32 -> vector<32x128xf32>
    %159 = vector.broadcast %54 : vector<1x128xf32> to vector<32x128xf32>
    %160 = arith.mulf %158, %159 : vector<32x128xf32>
    %161 = tpu.concatenate %151, %154, %146, %157, %160 in 0 : vector<32x128xf32>, vector<32x128xf32>, vector<32x128xf32>, vector<32x128xf32>, vector<32x128xf32> -> vector<160x128xf32>
    %162 = arith.truncf %161 : vector<160x128xf32> to vector<160x128xbf16>
    %c2 = arith.constant 2 : index
    %c0_59 = arith.constant 0 : index
    %c0_60 = arith.constant 0 : index
    %163 = vector.load %arg5[%c2, %c0_59, %c0_60] : memref<4x64x160xbf16, #tpu.memory_space<vmem>>, vector<1x64x160xbf16>
    %164 = vector.shape_cast %163 : vector<1x64x160xbf16> to vector<64x160xbf16>
    %cst_61 = arith.constant dense<0.000000e+00> : vector<64x128xf32>
    %165 = tpu.matmul %164, %162, %cst_61 {dimension_numbers = #tpu.dot_dimension_numbers<[1], [0], [0], [1], [0, 0, 1, 1], [], []>} : vector<64x160xbf16>, vector<160x128xbf16>, vector<64x128xf32> -> vector<64x128xf32>
    %c2_62 = arith.constant 2 : index
    %c0_63 = arith.constant 0 : index
    %c0_64 = arith.constant 0 : index
    %166 = vector.load %arg6[%c2_62, %c0_63, %c0_64] : memref<4x64x1xf32, #tpu.memory_space<vmem>>, vector<1x64x1xf32>
    %167 = vector.shape_cast %166 : vector<1x64x1xf32> to vector<64x1xf32>
    %168 = vector.broadcast %167 : vector<64x1xf32> to vector<64x128xf32>
    %169 = arith.addf %165, %168 : vector<64x128xf32>
    %170 = vector.extract_strided_slice %169 {offsets = [0, 0], sizes = [32, 128], strides = [1, 1]} : vector<64x128xf32> to vector<32x128xf32>
    %171 = math.tanh %170 : vector<32x128xf32>
    %172 = vector.extract_strided_slice %169 {offsets = [32, 0], sizes = [32, 128], strides = [1, 1]} : vector<64x128xf32> to vector<32x128xf32>
    %173 = arith.negf %172 : vector<32x128xf32>
    %174 = math.exp %173 : vector<32x128xf32>
    %cst_65 = arith.constant 1.000000e+00 : f32
    %175 = vector.broadcast %cst_65 : f32 to vector<32x128xf32>
    %176 = arith.addf %175, %174 : vector<32x128xf32>
    %177 = arith.divf %175, %176 : vector<32x128xf32>
    %178 = arith.mulf %171, %177 : vector<32x128xf32>
    %179 = arith.truncf %178 : vector<32x128xf32> to vector<32x128xbf16>
    %c2_66 = arith.constant 2 : index
    %c0_67 = arith.constant 0 : index
    %c0_68 = arith.constant 0 : index
    %180 = vector.load %arg7[%c2_66, %c0_67, %c0_68] : memref<3x64x32xbf16, #tpu.memory_space<vmem>>, vector<1x64x32xbf16>
    %181 = vector.shape_cast %180 : vector<1x64x32xbf16> to vector<64x32xbf16>
    %cst_69 = arith.constant dense<0.000000e+00> : vector<64x128xf32>
    %182 = tpu.matmul %181, %179, %cst_69 {dimension_numbers = #tpu.dot_dimension_numbers<[1], [0], [0], [1], [0, 0, 1, 1], [], []>} : vector<64x32xbf16>, vector<32x128xbf16>, vector<64x128xf32> -> vector<64x128xf32>
    %c2_70 = arith.constant 2 : index
    %c0_71 = arith.constant 0 : index
    %c0_72 = arith.constant 0 : index
    %183 = vector.load %arg8[%c2_70, %c0_71, %c0_72] : memref<3x64x1xf32, #tpu.memory_space<vmem>>, vector<1x64x1xf32>
    %184 = vector.shape_cast %183 : vector<1x64x1xf32> to vector<64x1xf32>
    %185 = vector.broadcast %184 : vector<64x1xf32> to vector<64x128xf32>
    %186 = arith.addf %182, %185 : vector<64x128xf32>
    %187 = vector.extract_strided_slice %186 {offsets = [0, 0], sizes = [32, 128], strides = [1, 1]} : vector<64x128xf32> to vector<32x128xf32>
    %188 = arith.addf %146, %187 : vector<32x128xf32>
    %189 = arith.mulf %188, %7 : vector<32x128xf32>
    %190 = vector.extract_strided_slice %186 {offsets = [32, 0], sizes = [32, 128], strides = [1, 1]} : vector<64x128xf32> to vector<32x128xf32>
    %191 = arith.addf %148, %190 : vector<32x128xf32>
    %c2_i32_73 = arith.constant 2 : i32
    %192 = tpu.dynamic_rotate %189 by %c2_i32_73 dim 1 : vector<32x128xf32>, i32 -> vector<32x128xf32>
    %193 = vector.broadcast %21 : vector<1x128xf32> to vector<32x128xf32>
    %194 = arith.mulf %192, %193 : vector<32x128xf32>
    %c1_i32_74 = arith.constant 1 : i32
    %195 = tpu.dynamic_rotate %189 by %c1_i32_74 dim 1 : vector<32x128xf32>, i32 -> vector<32x128xf32>
    %196 = vector.broadcast %32 : vector<1x128xf32> to vector<32x128xf32>
    %197 = arith.mulf %195, %196 : vector<32x128xf32>
    %c127_i32_75 = arith.constant 127 : i32
    %198 = tpu.dynamic_rotate %189 by %c127_i32_75 dim 1 : vector<32x128xf32>, i32 -> vector<32x128xf32>
    %199 = vector.broadcast %43 : vector<1x128xf32> to vector<32x128xf32>
    %200 = arith.mulf %198, %199 : vector<32x128xf32>
    %c126_i32_76 = arith.constant 126 : i32
    %201 = tpu.dynamic_rotate %189 by %c126_i32_76 dim 1 : vector<32x128xf32>, i32 -> vector<32x128xf32>
    %202 = vector.broadcast %54 : vector<1x128xf32> to vector<32x128xf32>
    %203 = arith.mulf %201, %202 : vector<32x128xf32>
    %204 = tpu.concatenate %194, %197, %189, %200, %203 in 0 : vector<32x128xf32>, vector<32x128xf32>, vector<32x128xf32>, vector<32x128xf32>, vector<32x128xf32> -> vector<160x128xf32>
    %205 = arith.truncf %204 : vector<160x128xf32> to vector<160x128xbf16>
    %c3 = arith.constant 3 : index
    %c0_77 = arith.constant 0 : index
    %c0_78 = arith.constant 0 : index
    %206 = vector.load %arg5[%c3, %c0_77, %c0_78] : memref<4x64x160xbf16, #tpu.memory_space<vmem>>, vector<1x64x160xbf16>
    %207 = vector.shape_cast %206 : vector<1x64x160xbf16> to vector<64x160xbf16>
    %cst_79 = arith.constant dense<0.000000e+00> : vector<64x128xf32>
    %208 = tpu.matmul %207, %205, %cst_79 {dimension_numbers = #tpu.dot_dimension_numbers<[1], [0], [0], [1], [0, 0, 1, 1], [], []>} : vector<64x160xbf16>, vector<160x128xbf16>, vector<64x128xf32> -> vector<64x128xf32>
    %c3_80 = arith.constant 3 : index
    %c0_81 = arith.constant 0 : index
    %c0_82 = arith.constant 0 : index
    %209 = vector.load %arg6[%c3_80, %c0_81, %c0_82] : memref<4x64x1xf32, #tpu.memory_space<vmem>>, vector<1x64x1xf32>
    %210 = vector.shape_cast %209 : vector<1x64x1xf32> to vector<64x1xf32>
    %211 = vector.broadcast %210 : vector<64x1xf32> to vector<64x128xf32>
    %212 = arith.addf %208, %211 : vector<64x128xf32>
    %213 = vector.extract_strided_slice %212 {offsets = [0, 0], sizes = [32, 128], strides = [1, 1]} : vector<64x128xf32> to vector<32x128xf32>
    %214 = math.tanh %213 : vector<32x128xf32>
    %215 = vector.extract_strided_slice %212 {offsets = [32, 0], sizes = [32, 128], strides = [1, 1]} : vector<64x128xf32> to vector<32x128xf32>
    %216 = arith.negf %215 : vector<32x128xf32>
    %217 = math.exp %216 : vector<32x128xf32>
    %cst_83 = arith.constant 1.000000e+00 : f32
    %218 = vector.broadcast %cst_83 : f32 to vector<32x128xf32>
    %219 = arith.addf %218, %217 : vector<32x128xf32>
    %220 = arith.divf %218, %219 : vector<32x128xf32>
    %221 = arith.mulf %214, %220 : vector<32x128xf32>
    %222 = arith.truncf %221 : vector<32x128xf32> to vector<32x128xbf16>
    %c0_84 = arith.constant 0 : index
    %c0_85 = arith.constant 0 : index
    %223 = vector.load %arg9[%c0_84, %c0_85] : memref<32x32xbf16, #tpu.memory_space<vmem>>, vector<32x32xbf16>
    %cst_86 = arith.constant dense<0.000000e+00> : vector<32x128xf32>
    %224 = tpu.matmul %223, %222, %cst_86 {dimension_numbers = #tpu.dot_dimension_numbers<[1], [0], [0], [1], [0, 0, 1, 1], [], []>} : vector<32x32xbf16>, vector<32x128xbf16>, vector<32x128xf32> -> vector<32x128xf32>
    %c0_87 = arith.constant 0 : index
    %c0_88 = arith.constant 0 : index
    %225 = vector.load %arg10[%c0_87, %c0_88] : memref<32x1xf32, #tpu.memory_space<vmem>>, vector<32x1xf32>
    %226 = vector.broadcast %225 : vector<32x1xf32> to vector<32x128xf32>
    %227 = arith.addf %224, %226 : vector<32x128xf32>
    %228 = arith.addf %191, %227 : vector<32x128xf32>
    %229 = arith.mulf %228, %7 : vector<32x128xf32>
    %230 = arith.truncf %229 : vector<32x128xf32> to vector<32x128xbf16>
    %c0_89 = arith.constant 0 : index
    %c0_90 = arith.constant 0 : index
    %c0_91 = arith.constant 0 : index
    %231 = vector.load %arg11[%c0_89, %c0_90, %c0_91] : memref<2x8x32xbf16, #tpu.memory_space<vmem>>, vector<1x8x32xbf16>
    %232 = vector.shape_cast %231 : vector<1x8x32xbf16> to vector<8x32xbf16>
    %cst_92 = arith.constant dense<0.000000e+00> : vector<8x128xf32>
    %233 = tpu.matmul %232, %230, %cst_92 {dimension_numbers = #tpu.dot_dimension_numbers<[1], [0], [0], [1], [0, 0, 1, 1], [], []>} : vector<8x32xbf16>, vector<32x128xbf16>, vector<8x128xf32> -> vector<8x128xf32>
    %c0_93 = arith.constant 0 : index
    %c0_94 = arith.constant 0 : index
    %c0_95 = arith.constant 0 : index
    %234 = vector.load %arg12[%c0_93, %c0_94, %c0_95] : memref<2x8x1xf32, #tpu.memory_space<vmem>>, vector<1x8x1xf32>
    %235 = vector.shape_cast %234 : vector<1x8x1xf32> to vector<8x1xf32>
    %236 = vector.broadcast %235 : vector<8x1xf32> to vector<8x128xf32>
    %237 = arith.addf %233, %236 : vector<8x128xf32>
    %238 = arith.mulf %237, %9 : vector<8x128xf32>
    %c1_96 = arith.constant 1 : index
    %c0_97 = arith.constant 0 : index
    %c0_98 = arith.constant 0 : index
    %239 = vector.load %arg11[%c1_96, %c0_97, %c0_98] : memref<2x8x32xbf16, #tpu.memory_space<vmem>>, vector<1x8x32xbf16>
    %240 = vector.shape_cast %239 : vector<1x8x32xbf16> to vector<8x32xbf16>
    %cst_99 = arith.constant dense<0.000000e+00> : vector<8x128xf32>
    %241 = tpu.matmul %240, %230, %cst_99 {dimension_numbers = #tpu.dot_dimension_numbers<[1], [0], [0], [1], [0, 0, 1, 1], [], []>} : vector<8x32xbf16>, vector<32x128xbf16>, vector<8x128xf32> -> vector<8x128xf32>
    %c1_100 = arith.constant 1 : index
    %c0_101 = arith.constant 0 : index
    %c0_102 = arith.constant 0 : index
    %242 = vector.load %arg12[%c1_100, %c0_101, %c0_102] : memref<2x8x1xf32, #tpu.memory_space<vmem>>, vector<1x8x1xf32>
    %243 = vector.shape_cast %242 : vector<1x8x1xf32> to vector<8x1xf32>
    %244 = vector.broadcast %243 : vector<8x1xf32> to vector<8x128xf32>
    %245 = arith.addf %241, %244 : vector<8x128xf32>
    %246 = arith.mulf %245, %9 : vector<8x128xf32>
    %247 = math.exp %246 : vector<8x128xf32>
    %248 = arith.mulf %3, %247 : vector<8x128xf32>
    %249 = arith.mulf %248, %9 : vector<8x128xf32>
    %250 = arith.addf %238, %249 : vector<8x128xf32>
    %251 = tpu.concatenate %2, %250 in 0 : vector<8x128xf32>, vector<8x128xf32> -> vector<16x128xf32>
    %c0_103 = arith.constant 0 : index
    %c0_104 = arith.constant 0 : index
    %c0_105 = arith.constant 0 : index
    %252 = vector.load %arg13[%c0_103, %c0_104, %c0_105] : memref<1x16x128xf32, #tpu.memory_space<vmem>>, vector<1x16x128xf32>
    %253 = vector.shape_cast %252 : vector<1x16x128xf32> to vector<16x128xf32>
    %254 = vector.shape_cast %251 : vector<16x128xf32> to vector<1x16x128xf32>
    tpu.vector_store %arg13[%c0_103, %c0_104, %c0_105], %254 {strides = array<i32>} : memref<1x16x128xf32, #tpu.memory_space<vmem>>, vector<1x16x128xf32>,
    %cst_106 = arith.constant dense<0.000000e+00> : vector<128xf32>
    %255 = vector.multi_reduction <add>, %246, %cst_106 [0] : vector<8x128xf32> to vector<128xf32>
    %256 = vector.shape_cast %255 : vector<128xf32> to vector<1x128xf32>
    %c0_107 = arith.constant 0 : index
    %c0_108 = arith.constant 0 : index
    %c0_109 = arith.constant 0 : index
    %257 = vector.load %arg14[%c0_107, %c0_108, %c0_109] : memref<1x1x128xf32, #tpu.memory_space<vmem>>, vector<1x1x128xf32>
    %258 = vector.shape_cast %257 : vector<1x1x128xf32> to vector<1x128xf32>
    %259 = vector.shape_cast %256 : vector<1x128xf32> to vector<1x1x128xf32>
    tpu.vector_store %arg14[%c0_107, %c0_108, %c0_109], %259 {strides = array<i32>} : memref<1x1x128xf32, #tpu.memory_space<vmem>>, vector<1x1x128xf32>,
    return
  }
  func.func @transform_0(%arg0: i32) -> (i32, i32, i32) {
    %c0_i32 = arith.constant 0 : i32
    %c0_i32_0 = arith.constant 0 : i32
    %c0_i32_1 = arith.constant 0 : i32
    return %arg0, %c0_i32, %c0_i32_0 : i32, i32, i32
  }
  func.func @transform_1(%arg0: i32) -> (i32, i32, i32) {
    %c0_i32 = arith.constant 0 : i32
    %c0_i32_0 = arith.constant 0 : i32
    %c0_i32_1 = arith.constant 0 : i32
    return %arg0, %c0_i32, %c0_i32_0 : i32, i32, i32
  }
  func.func @transform_2(%arg0: i32) -> (i32, i32) {
    %c0_i32 = arith.constant 0 : i32
    %c0_i32_0 = arith.constant 0 : i32
    %c0_i32_1 = arith.constant 0 : i32
    return %c0_i32, %c0_i32_0 : i32, i32
  }
  func.func @transform_3(%arg0: i32) -> (i32, i32) {
    %c0_i32 = arith.constant 0 : i32
    %c0_i32_0 = arith.constant 0 : i32
    %c0_i32_1 = arith.constant 0 : i32
    return %c0_i32, %c0_i32_0 : i32, i32
  }
  func.func @transform_4(%arg0: i32) -> (i32, i32, i32) {
    %c0_i32 = arith.constant 0 : i32
    %c0_i32_0 = arith.constant 0 : i32
    %c0_i32_1 = arith.constant 0 : i32
    %c0_i32_2 = arith.constant 0 : i32
    return %c0_i32, %c0_i32_0, %c0_i32_1 : i32, i32, i32
  }
  func.func @transform_5(%arg0: i32) -> (i32, i32, i32) {
    %c0_i32 = arith.constant 0 : i32
    %c0_i32_0 = arith.constant 0 : i32
    %c0_i32_1 = arith.constant 0 : i32
    %c0_i32_2 = arith.constant 0 : i32
    return %c0_i32, %c0_i32_0, %c0_i32_1 : i32, i32, i32
  }
  func.func @transform_6(%arg0: i32) -> (i32, i32, i32) {
    %c0_i32 = arith.constant 0 : i32
    %c0_i32_0 = arith.constant 0 : i32
    %c0_i32_1 = arith.constant 0 : i32
    %c0_i32_2 = arith.constant 0 : i32
    return %c0_i32, %c0_i32_0, %c0_i32_1 : i32, i32, i32
  }
  func.func @transform_7(%arg0: i32) -> (i32, i32, i32) {
    %c0_i32 = arith.constant 0 : i32
    %c0_i32_0 = arith.constant 0 : i32
    %c0_i32_1 = arith.constant 0 : i32
    %c0_i32_2 = arith.constant 0 : i32
    return %c0_i32, %c0_i32_0, %c0_i32_1 : i32, i32, i32
  }
  func.func @transform_8(%arg0: i32) -> (i32, i32) {
    %c0_i32 = arith.constant 0 : i32
    %c0_i32_0 = arith.constant 0 : i32
    %c0_i32_1 = arith.constant 0 : i32
    return %c0_i32, %c0_i32_0 : i32, i32
  }
  func.func @transform_9(%arg0: i32) -> (i32, i32) {
    %c0_i32 = arith.constant 0 : i32
    %c0_i32_0 = arith.constant 0 : i32
    %c0_i32_1 = arith.constant 0 : i32
    return %c0_i32, %c0_i32_0 : i32, i32
  }
  func.func @transform_10(%arg0: i32) -> (i32, i32, i32) {
    %c0_i32 = arith.constant 0 : i32
    %c0_i32_0 = arith.constant 0 : i32
    %c0_i32_1 = arith.constant 0 : i32
    %c0_i32_2 = arith.constant 0 : i32
    return %c0_i32, %c0_i32_0, %c0_i32_1 : i32, i32, i32
  }
  func.func @transform_11(%arg0: i32) -> (i32, i32, i32) {
    %c0_i32 = arith.constant 0 : i32
    %c0_i32_0 = arith.constant 0 : i32
    %c0_i32_1 = arith.constant 0 : i32
    %c0_i32_2 = arith.constant 0 : i32
    return %c0_i32, %c0_i32_0, %c0_i32_1 : i32, i32, i32
  }
  func.func @transform_12(%arg0: i32) -> (i32, i32, i32) {
    %c0_i32 = arith.constant 0 : i32
    %c0_i32_0 = arith.constant 0 : i32
    %c0_i32_1 = arith.constant 0 : i32
    return %arg0, %c0_i32, %c0_i32_0 : i32, i32, i32
  }
  func.func @transform_13(%arg0: i32) -> (i32, i32, i32) {
    %c0_i32 = arith.constant 0 : i32
    %c0_i32_0 = arith.constant 0 : i32
    %c0_i32_1 = arith.constant 0 : i32
    return %arg0, %c0_i32, %c0_i32_0 : i32, i32, i32
  }
}

</mosaic_0001>

<bundles_post_ra>
// kernel: tpu_custom_call.1
= control target key start
LH: loop header
LB: loop body
LE: loop exit
PB: predicated region body
PF: predicated region fallthrough
CT: control target
= control target key end

     0   :  { %s4877_s0 = inlined_call_operand.hbm [shape: f32[2,16,128], index: 0, kind: input, shape index: {}]   ;;  %s4878_s1 = inlined_call_operand.hbm [shape: f32[2,1,128], index: 1, kind: input, shape index: {}]   ;;  %s4879_s2 = inlined_call_operand.hbm [shape: bf16[32,8], index: 2, kind: input, shape index: {}]   ;;  %s4880_s3 = inlined_call_operand.hbm [shape: f32[32,1], index: 3, kind: input, shape index: {}]   ;;  %s4881_s4 = inlined_call_operand.hbm [shape: bf16[4,64,160], index: 4, kind: input, shape index: {}]   ;;  %s4882_s5 = inlined_call_operand.hbm [shape: f32[4,64,1], index: 5, kind: input, shape index: {}]   ;;  %s4883_s6 = inlined_call_operand.hbm [shape: bf16[3,64,32], index: 6, kind: input, shape index: {}]   ;;  %s4884_s7 = inlined_call_operand.hbm [shape: f32[3,64,1], index: 7, kind: input, shape index: {}]   ;;  %s4885_s8 = inlined_call_operand.hbm [shape: bf16[32,32], index: 8, kind: input, shape index: {}]   ;;  %s4886_s9 = inlined_call_operand.hbm [shape: f32[32,1], index: 9, kind: input, shape index: {}]   ;;  %s4887_s10 = inlined_call_operand.hbm [shape: bf16[2,8,32], index: 10, kind: input, shape index: {}]   ;;  %s4888_s11 = inlined_call_operand.hbm [shape: f32[2,8,1], index: 11, kind: input, shape index: {}]   ;;  %s4889_s12 = inlined_call_operand.hbm [shape: f32[2,16,128], index: 12, kind: output, shape index: {0}]   ;;  %s4890_s13 = inlined_call_operand.hbm [shape: f32[2,1,128], index: 13, kind: output, shape index: {1}]  }
   0x1   :  { %4908 = sst [smem:[#allocation36_spill]] %s4877_s0 }
   0x2   :  { %4909 = sst [smem:[#allocation37_spill]] %s4878_s1 }
   0x3   :  { %4910 = sst [smem:[#allocation38_spill]] %s4879_s2 }
   0x4   :  { %4911 = sst [smem:[#allocation39_spill]] %s4880_s3 }
   0x5   :  { %4912 = sst [smem:[#allocation40_spill]] %s4881_s4 }
   0x6   :  { %4913 = sst [smem:[#allocation41_spill]] %s4882_s5 }
   0x7   :  { %4914 = sst [smem:[#allocation42_spill]] %s4883_s6 }
   0x8   :  { %4915 = sst [smem:[#allocation43_spill]] %s4884_s7 }
   0x9   :  { %4916 = sst [smem:[#allocation44_spill]] %s4885_s8 }
   0xa   :  { %4917 = sst [smem:[#allocation45_spill]] %s4889_s12 }
   0xb   :  { %4918 = sst [smem:[#allocation46_spill]] %s4890_s13 }
   0xc   :  { %19 = vsyncpa [#allocation3], 0 }
   0xd   :  { %21 = vsyncpa [#allocation3 + $0x1], 0 }
   0xe   :  { %22 = vsyncpa [#allocation6], 0 }
   0xf   :  { %24 = vsyncpa [#allocation6 + $0x1], 0 }
  0x10   :  { %25 = vsyncpa [#allocation9], 0 }
  0x11   :  { %26 = vsyncpa [#allocation12], 0 }
  0x12   :  { %27 = vsyncpa [#allocation15], 0 }
  0x13   :  { %28 = vsyncpa [#allocation18], 0 }
  0x14   :  { %29 = vsyncpa [#allocation21], 0 }
  0x15   :  { %30 = vsyncpa [#allocation4], 0 }
  0x16   :  { %32 = vsyncpa [#allocation4 + $0x1], 0 }
  0x17   :  { %33 = vsyncpa [#allocation24], 0 }
  0x18   :  { %35 = vsyncpa [#allocation24 + $0x1], 0  ;;  %s3972_s25 = smov 0   ;;  %s3974_s26 = smov 0  }
  0x19   :  { %s3976_s27 = smov 0   ;;  %s3978_s28 = smov 0  }
  0x1a LB: > { %s3875_s29 = smov [#allocation7]   ;;  %s3993_s14 = sadd.s32 4294967295, %s3873_s28   ;;  %s3873_s28 = sphi %s3978_s28, %s4966_s28   ;;  %s3869_s27 = sphi %s3976_s27, %s4965_s27   ;;  %s3865_s26 = sphi %s3974_s26, %s4964_s26   ;;  %s3861_s25 = sphi %s3972_s25, %s4963_s25  }
  0x1b   : > { %s372_s30 = sshll.u32 %s3875_s29, 4  ;;  %p2806_p0 = scmp.ge.s32.totalorder %s3873_s28, 1  ;;  %s3998_s30 = int_to_ptr.vmem [resolvable:$true] %s372_s30 }
  0x1c   : > { %p4898_p1 = scmp.eq.s32.totalorder %s3993_s14, 0  ;;  %p360_p2 = scmp.lt.s32.totalorder %s3873_s28, 3 }
  0x1d   : > { %s3876_s16 = smov [#allocation8]   ;;  %s3877_s19 = smov [#allocation11]  }
  0x1e   : > { %p4000_p3 = pnand %p2806_p0, %p360_p2  ;;  %s385_s17 = sshll.u32 %s3876_s16, 4  ;;  %s4013_s17 = int_to_ptr.vmem [resolvable:$true] %s385_s17 }
  0x1f   : > { %s4015_s20 = sshll.u32 %s3877_s19, 4  ;;  %s4922_s2 = sld [smem:[#allocation38_spill]]  ;;  %s412_s20 = int_to_ptr.vmem [resolvable:$true] %s4015_s20 }
  0x20   : > { %s4919_s15 = scalar_select %p4000_p3, 1, 0 }
  0x21   : > { %p3120_p5 = pneg %p4000_p3 }
  0x22   : > { %4920 = sst [smem:[#allocation35_spill]] %s4919_s15 }
  0x23   : > { %p4009_p6 = pnand %p3120_p5, %p4898_p1 }
  0x25   : > { %s3407_s23 = scalar_lea.hbm %s4922_s2, 256  ;;  %p4025_p8 = pneg %p4009_p6 }
  0x26   : > { %p3408_p7 = scmp.ne.s32.totalorder %s4922_s2, %s3407_s23  ;;  %p3414_p11 = scmp.lt.u32.totalorder %s3407_s23, %s4922_s2 }
  0x28   : > { %p3410_p9 = pnand %p4025_p8, %p3408_p7 }
  0x2a   : > { %p3411_p10 = pneg %p3410_p9 }
  0x2c   : > { %p3416_p12 = pnand %p3414_p11, %p3411_p10 }
  0x2e   : > { %3419 = shalt.err (!%p3416_p12)
}
  0x2f   : > { %s3420_s21 = scalar_lea.vmem %s3998_s30, 256  ;;  %p3428_p5 = scmp.lt.s32.totalorder %s3998_s30, %s3998_s30 }
  0x30   : > { %p3421_p13 = scmp.ne.s32.totalorder %s3998_s30, %s3420_s21  ;;  %p3429_p4 = scmp.lt.s32.totalorder %s3420_s21, %s3420_s21 }
  0x32   : > { %p3423_p0 = pnand %p3421_p13, %p4025_p8  ;;  %p3430_p7 = por %p3429_p4, %p3428_p5 }
  0x34   : > { %p3424_p2 = pneg %p3423_p0 }
  0x36   : > { %p3431_p9 = pnand %p3430_p7, %p3424_p2 }
  0x38   : > { %3434 = shalt.err (!%p3431_p9)
}
  0x39   : > { %s4896_s22 = smov 64   ;;  %s4900_s12 = smov 4  }
  0x3a   : > { %3123 = dma.hbm_to_vmem [thread:$0]  (!%p4009_p6), %s4922_s2, 256, %s3998_s30, [#allocation6], %s4896_s22, %s4896_s22, %s4900_s12  }
  0x3b   : > { %s4924_s3 = sld [smem:[#allocation39_spill]] }
  0x41   : > { %s3435_s21 = scalar_lea.hbm %s4924_s3, 512 }
  0x42   : > { %p3436_p4 = scmp.ne.s32.totalorder %s4924_s3, %s3435_s21  ;;  %p3442_p12 = scmp.lt.u32.totalorder %s3435_s21, %s4924_s3 }
  0x44   : > { %p3438_p10 = pnand %p3436_p4, %p4025_p8 }
  0x46   : > { %p3439_p11 = pneg %p3438_p10 }
  0x48   : > { %p3444_p13 = pnand %p3442_p12, %p3439_p11 }
  0x4a   : > { %3447 = shalt.err (!%p3444_p13)
}
  0x4b   : > { %s3448_s30 = scalar_lea.vmem %s4013_s17, 512  ;;  %p3456_p7 = scmp.lt.s32.totalorder %s4013_s17, %s4013_s17 }
  0x4c   : > { %p3449_p0 = scmp.ne.s32.totalorder %s4013_s17, %s3448_s30  ;;  %p3457_p9 = scmp.lt.s32.totalorder %s3448_s30, %s3448_s30 }
  0x4e   : > { %p3451_p2 = pnand %p3449_p0, %p4025_p8  ;;  %p3458_p4 = por %p3457_p9, %p3456_p7 }
  0x50   : > { %p3452_p5 = pneg %p3451_p2 }
  0x52   : > { %p3459_p10 = pnand %p3458_p4, %p3452_p5 }
  0x54   : > { %3462 = shalt.err (!%p3459_p10)
}
  0x55   : > { %s4902_s13 = smov 128   ;;  %s4904_s0 = smov 8  }
  0x56   : > { %3126 = dma.hbm_to_vmem [thread:$0]  (!%p4009_p6), %s4924_s3, 512, %s4013_s17, [#allocation9], %s4902_s13, %s4902_s13, %s4904_s0  }
  0x57   : > { %s4925_s5 = sld [smem:[#allocation41_spill]] }
  0x5d   : > { %s3463_s29 = scalar_lea.hbm %s4925_s5, 4096 }
  0x5e   : > { %p3464_p11 = scmp.ne.s32.totalorder %s4925_s5, %s3463_s29  ;;  %p3470_p0 = scmp.lt.u32.totalorder %s3463_s29, %s4925_s5 }
  0x60   : > { %p3466_p12 = pnand %p3464_p11, %p4025_p8 }
  0x62   : > { %p3467_p13 = pneg %p3466_p12 }
  0x64   : > { %p3472_p2 = pnand %p3470_p0, %p3467_p13 }
  0x66   : > { %3475 = shalt.err (!%p3472_p2)
}
  0x67   : > { %s3476_s1 = scalar_lea.vmem %s412_s20, 4096  ;;  %p3484_p4 = scmp.lt.s32.totalorder %s412_s20, %s412_s20 }
  0x68   : > { %p3477_p5 = scmp.ne.s32.totalorder %s412_s20, %s3476_s1  ;;  %p3485_p10 = scmp.lt.s32.totalorder %s3476_s1, %s3476_s1 }
  0x6a   : > { %p3479_p7 = pnand %p3477_p5, %p4025_p8  ;;  %p3486_p1 = por %p3485_p10, %p3484_p4 }
  0x6c   : > { %p3480_p9 = pneg %p3479_p7 }
  0x6e   : > { %p3487_p3 = pnand %p3486_p1, %p3480_p9 }
  0x70   : > { %3490 = shalt.err (!%p3487_p3)
}
  0x71   : > { %3132 = dma.hbm_to_vmem [thread:$0]  (!%p4009_p6), %s4925_s5, 4096, %s412_s20, [#allocation12], %s4902_s13, %s4902_s13, %s4904_s0  }
  0x72   : > { %s3882_s15 = smov [#allocation14]   ;;  %s3883_s24 = smov [#allocation17]  }
  0x73   : > { %s437_s23 = sshll.u32 %s3882_s15, 4  ;;  %s463_s29 = sshll.u32 %s3883_s24, 4  ;;  %s438_s23 = int_to_ptr.vmem [resolvable:$true] %s437_s23  ;;  %s464_s29 = int_to_ptr.vmem [resolvable:$true] %s463_s29 }
  0x74   : > { %s4926_s7 = sld [smem:[#allocation43_spill]] }
  0x7a   : > { %s3491_s30 = scalar_lea.hbm %s4926_s7, 3072 }
  0x7b   : > { %p3492_p1 = scmp.ne.s32.totalorder %s4926_s7, %s3491_s30  ;;  %p3498_p12 = scmp.lt.u32.totalorder %s3491_s30, %s4926_s7 }
  0x7d   : > { %p3494_p3 = pnand %p3492_p1, %p4025_p8 }
  0x7f   : > { %p3495_p11 = pneg %p3494_p3 }
  0x81   : > { %p3500_p13 = pnand %p3498_p12, %p3495_p11 }
  0x83   : > { %3503 = shalt.err (!%p3500_p13)
}
  0x84   : > { %s3504_s20 = scalar_lea.vmem %s438_s23, 3072  ;;  %p3512_p7 = scmp.lt.s32.totalorder %s438_s23, %s438_s23 }
  0x85   : > { %p3505_p0 = scmp.ne.s32.totalorder %s438_s23, %s3504_s20  ;;  %p3513_p9 = scmp.lt.s32.totalorder %s3504_s20, %s3504_s20 }
  0x87   : > { %p3507_p2 = pnand %p3505_p0, %p4025_p8  ;;  %p3514_p4 = por %p3513_p9, %p3512_p7 }
  0x89   : > { %p3508_p5 = pneg %p3507_p2 }
  0x8b   : > { %p3515_p10 = pnand %p3514_p4, %p3508_p5 }
  0x8d   : > { %3518 = shalt.err (!%p3515_p10)
}
  0x8e   : > { %3138 = dma.hbm_to_vmem [thread:$0]  (!%p4009_p6), %s4926_s7, 3072, %s438_s23, [#allocation15], %s4902_s13, %s4902_s13, %s4904_s0  }
  0x8f   : > { %s3519_s24 = scalar_lea.hbm %s4886_s9, 512 }
  0x90   : > { %p3520_p1 = scmp.ne.s32.totalorder %s4886_s9, %s3519_s24  ;;  %p3526_p12 = scmp.lt.u32.totalorder %s3519_s24, %s4886_s9 }
  0x92   : > { %p3522_p3 = pnand %p3520_p1, %p4025_p8 }
  0x94   : > { %p3523_p11 = pneg %p3522_p3 }
  0x96   : > { %p3528_p13 = pnand %p3526_p12, %p3523_p11 }
  0x98   : > { %3531 = shalt.err (!%p3528_p13)
}
  0x99   : > { %s3532_s17 = scalar_lea.vmem %s464_s29, 512  ;;  %p3540_p7 = scmp.lt.s32.totalorder %s464_s29, %s464_s29 }
  0x9a   : > { %p3533_p0 = scmp.ne.s32.totalorder %s464_s29, %s3532_s17  ;;  %p3541_p9 = scmp.lt.s32.totalorder %s3532_s17, %s3532_s17 }
  0x9c   : > { %p3535_p2 = pnand %p3533_p0, %p4025_p8  ;;  %p3542_p4 = por %p3541_p9, %p3540_p7 }
  0x9e   : > { %p3536_p5 = pneg %p3535_p2 }
  0xa0   : > { %p3543_p10 = pnand %p3542_p4, %p3536_p5 }
  0xa2   : > { %3546 = shalt.err (!%p3543_p10)
}
  0xa3   : > { %3144 = dma.hbm_to_vmem [thread:$0]  (!%p4009_p6), %s4886_s9, 512, %s464_s29, [#allocation18], %s4902_s13, %s4902_s13, %s4904_s0  }
  0xa4   : > { %s3884_s2 = smov [#allocation10]   ;;  %s3885_s22 = smov [#allocation13]  }
  0xa5   : > { %s398_s12 = sshll.u32 %s3884_s2, 4  ;;  %s424_s15 = sshll.u32 %s3885_s22, 4  ;;  %s399_s12 = int_to_ptr.vmem [resolvable:$true] %s398_s12  ;;  %s425_s15 = int_to_ptr.vmem [resolvable:$true] %s424_s15 }
  0xa6   : > { %s4927_s4 = sld [smem:[#allocation40_spill]] }
  0xac   : > { %s3547_s21 = scalar_lea.hbm %s4927_s4, 4096 }
  0xad   : > { %p3548_p1 = scmp.ne.s32.totalorder %s4927_s4, %s3547_s21  ;;  %p3554_p12 = scmp.lt.u32.totalorder %s3547_s21, %s4927_s4 }
  0xaf   : > { %p3550_p3 = pnand %p3548_p1, %p4025_p8 }
  0xb1   : > { %p3551_p11 = pneg %p3550_p3 }
  0xb3   : > { %p3556_p13 = pnand %p3554_p12, %p3551_p11 }
  0xb5   : > { %3559 = shalt.err (!%p3556_p13)
}
  0xb6   : > { %s3560_s29 = scalar_lea.vmem %s399_s12, 4096  ;;  %p3568_p7 = scmp.lt.s32.totalorder %s399_s12, %s399_s12 }
  0xb7   : > { %p3561_p0 = scmp.ne.s32.totalorder %s399_s12, %s3560_s29  ;;  %p3569_p9 = scmp.lt.s32.totalorder %s3560_s29, %s3560_s29 }
  0xb9   : > { %p3563_p2 = pnand %p3561_p0, %p4025_p8  ;;  %p3570_p4 = por %p3569_p9, %p3568_p7 }
  0xbb   : > { %p3564_p5 = pneg %p3563_p2 }
  0xbd   : > { %p3571_p10 = pnand %p3570_p4, %p3564_p5 }
  0xbf   : > { %3574 = shalt.err (!%p3571_p10)
}
  0xc0   : > { %3129 = dma.hbm_to_vmem [thread:$0]  (!%p4009_p6), %s4927_s4, 4096, %s399_s12, [#allocation9], %s4902_s13, %s4902_s13, %s4904_s0  }
  0xc1   : > { %s4928_s6 = sld [smem:[#allocation42_spill]] }
  0xc7   : > { %s3575_s19 = scalar_lea.hbm %s4928_s6, 1536 }
  0xc8   : > { %p3576_p1 = scmp.ne.s32.totalorder %s4928_s6, %s3575_s19  ;;  %p3582_p12 = scmp.lt.u32.totalorder %s3575_s19, %s4928_s6 }
  0xca   : > { %p3578_p3 = pnand %p3576_p1, %p4025_p8 }
  0xcc   : > { %p3579_p11 = pneg %p3578_p3 }
  0xce   : > { %p3584_p13 = pnand %p3582_p12, %p3579_p11 }
  0xd0   : > { %3587 = shalt.err (!%p3584_p13)
}
  0xd1   : > { %s3588_s23 = scalar_lea.vmem %s425_s15, 1536  ;;  %p3596_p7 = scmp.lt.s32.totalorder %s425_s15, %s425_s15 }
  0xd2   : > { %p3589_p0 = scmp.ne.s32.totalorder %s425_s15, %s3588_s23  ;;  %p3597_p9 = scmp.lt.s32.totalorder %s3588_s23, %s3588_s23 }
  0xd4   : > { %p3591_p2 = pnand %p3589_p0, %p4025_p8  ;;  %p3598_p4 = por %p3597_p9, %p3596_p7 }
  0xd6   : > { %p3592_p5 = pneg %p3591_p2 }
  0xd8   : > { %p3599_p10 = pnand %p3598_p4, %p3592_p5 }
  0xda   : > { %3602 = shalt.err (!%p3599_p10)
}
  0xdb   : > { %s4929_s12 = smov 4   ;;  %s4930_s29 = smov 64  }
  0xdc   : > { %3135 = dma.hbm_to_vmem [thread:$0]  (!%p4009_p6), %s4928_s6, 1536, %s425_s15, [#allocation12], %s4930_s29, %s4930_s29, %s4929_s12  }
  0xdd   : > { %s3886_s22 = smov [#allocation16]   ;;  %s3887_s19 = smov [#allocation19]  }
  0xde   : > { %s450_s24 = sshll.u32 %s3886_s22, 4  ;;  %s476_s21 = sshll.u32 %s3887_s19, 4  ;;  %s451_s24 = int_to_ptr.vmem [resolvable:$true] %s450_s24  ;;  %s477_s21 = int_to_ptr.vmem [resolvable:$true] %s476_s21 }
  0xdf   : > { %s4931_s8 = sld [smem:[#allocation44_spill]] }
  0xe5   : > { %s3603_s17 = scalar_lea.hbm %s4931_s8, 256 }
  0xe6   : > { %p3604_p1 = scmp.ne.s32.totalorder %s4931_s8, %s3603_s17  ;;  %p3610_p12 = scmp.lt.u32.totalorder %s3603_s17, %s4931_s8 }
  0xe8   : > { %p3606_p3 = pnand %p3604_p1, %p4025_p8 }
  0xea   : > { %p3607_p11 = pneg %p3606_p3 }
  0xec   : > { %p3612_p13 = pnand %p3610_p12, %p3607_p11 }
  0xee   : > { %3615 = shalt.err (!%p3612_p13)
}
  0xef   : > { %s3616_s15 = scalar_lea.vmem %s451_s24, 256  ;;  %p3624_p7 = scmp.lt.s32.totalorder %s451_s24, %s451_s24 }
  0xf0   : > { %p3617_p0 = scmp.ne.s32.totalorder %s451_s24, %s3616_s15  ;;  %p3625_p9 = scmp.lt.s32.totalorder %s3616_s15, %s3616_s15 }
  0xf2   : > { %p3619_p2 = pnand %p3617_p0, %p4025_p8  ;;  %p3626_p4 = por %p3625_p9, %p3624_p7 }
  0xf4   : > { %p3620_p5 = pneg %p3619_p2 }
  0xf6   : > { %p3627_p10 = pnand %p3626_p4, %p3620_p5 }
  0xf8   : > { %3630 = shalt.err (!%p3627_p10)
}
  0xf9   : > { %3141 = dma.hbm_to_vmem [thread:$0]  (!%p4009_p6), %s4931_s8, 256, %s451_s24, [#allocation15], %s4930_s29, %s4930_s29, %s4929_s12  }
  0xfa   : > { %s3631_s19 = scalar_lea.hbm %s4887_s10, 128 }
  0xfb   : > { %p3632_p1 = scmp.ne.s32.totalorder %s4887_s10, %s3631_s19  ;;  %p3638_p12 = scmp.lt.u32.totalorder %s3631_s19, %s4887_s10 }
  0xfd   : > { %p3634_p3 = pnand %p3632_p1, %p4025_p8 }
  0xff   : > { %p3635_p11 = pneg %p3634_p3 }
 0x101   : > { %p3640_p13 = pnand %p3638_p12, %p3635_p11 }
 0x103   : > { %3643 = shalt.err (!%p3640_p13)
}
 0x104   : > { %s3644_s20 = scalar_lea.vmem %s477_s21, 128  ;;  %p3652_p7 = scmp.lt.s32.totalorder %s477_s21, %s477_s21 }
 0x105   : > { %p3645_p0 = scmp.ne.s32.totalorder %s477_s21, %s3644_s20  ;;  %p3653_p9 = scmp.lt.s32.totalorder %s3644_s20, %s3644_s20 }
 0x107   : > { %p3647_p2 = pnand %p3645_p0, %p4025_p8  ;;  %p3654_p4 = por %p3653_p9, %p3652_p7 }
 0x109   : > { %p3648_p5 = pneg %p3647_p2 }
 0x10b   : > { %p3655_p10 = pnand %p3654_p4, %p3648_p5 }
 0x10d   : > { %3658 = shalt.err (!%p3655_p10)
}
 0x10e   : > { %3147 = dma.hbm_to_vmem [thread:$0]  (!%p4009_p6), %s4887_s10, 128, %s477_s21, [#allocation18], %s4930_s29, %s4930_s29, %s4929_s12  }
 0x10f   : > { %s3888_s13 = smov [#allocation20]   ;;  %s3659_s19 = scalar_lea.hbm %s4888_s11, 256 }
 0x110   : > { %s489_s0 = sshll.u32 %s3888_s13, 4  ;;  %p3660_p1 = scmp.ne.s32.totalorder %s4888_s11, %s3659_s19  ;;  %s490_s0 = int_to_ptr.vmem [resolvable:$true] %s489_s0 }
 0x111   : > { %p3666_p12 = scmp.lt.u32.totalorder %s3659_s19, %s4888_s11 }
 0x112   : > { %p3662_p3 = pnand %p3660_p1, %p4025_p8 }
 0x114   : > { %p3663_p11 = pneg %p3662_p3 }
 0x116   : > { %p3668_p13 = pnand %p3666_p12, %p3663_p11 }
 0x118   : > { %3671 = shalt.err (!%p3668_p13)
}
 0x119   : > { %s3672_s12 = scalar_lea.vmem %s490_s0, 256  ;;  %p3680_p7 = scmp.lt.s32.totalorder %s490_s0, %s490_s0 }
 0x11a   : > { %p3673_p0 = scmp.ne.s32.totalorder %s490_s0, %s3672_s12  ;;  %p3681_p9 = scmp.lt.s32.totalorder %s3672_s12, %s3672_s12 }
 0x11c   : > { %p3675_p2 = pnand %p3673_p0, %p4025_p8  ;;  %p3682_p4 = por %p3681_p9, %p3680_p7 }
 0x11e   : > { %p3676_p5 = pneg %p3675_p2 }
 0x120   : > { %p3683_p10 = pnand %p3682_p4, %p3676_p5 }
 0x122   : > { %3686 = shalt.err (!%p3683_p10)
}
 0x123   : > { %s4932_s29 = smov 8   ;;  %s4933_s21 = smov 128  }
 0x124   : > { %3150 = dma.hbm_to_vmem [thread:$0]  (!%p4009_p6), %s4888_s11, 256, %s490_s0, [#allocation21], %s4933_s21, %s4933_s21, %s4932_s29  }
 0x125   : > { %s2805_s18 = sadd.s32 4294967294, %s3873_s28   ;;  %s4246_s16 = sadd.s32 1, %s3873_s28  }
 0x126   : > { %s45_s15 = ssub.s32 %s3873_s28, %s4246_s16  ;;  %s48_s13 = sadd.s32 1, %s3869_s27 }
 0x127   : > { %p46_p8 = scmp.eq.s32.totalorder %s45_s15, 0  ;;  %p55_p1 = scmp.ne.s32.totalorder %s3869_s27, %s3865_s26 }
 0x128   : > { %p56_p3 = scmp.eq.s32.totalorder %s3873_s28, 0  ;;  %p61_p11 = scmp.ne.s32.totalorder %s3865_s26, %s3861_s25 }
 0x129   : > { %s4257_s2 = scalar_select %p46_p8, %s3869_s27, %s48_s13  }
 0x12a   : > { %p4259_p12 = por %p56_p3, %p55_p1  ;;  %p4935_p13 = scmp.eq.s32.totalorder %s3993_s14, 0 }
 0x12b   : > { %p321_p0 = scmp.eq.s32.totalorder %s3993_s14, 1  ;;  %p327_p2 = scmp.eq.s32.totalorder %s2805_s18, 1 }
 0x12c   : > { %p4265_p6 = por %p4935_p13, %p61_p11  ;;  %p3175_p5 = scmp.lt.s32.totalorder %s3873_s28, 2 }
 0x12d   : > { %s4272_s19 = sand.u32 1, %s3869_s27   ;;  %p4274_p7 = por %p321_p0, %p55_p1 }
 0x12e   : > { %s4936_s0 = scalar_select %p4265_p6, 1, 0 }
 0x12f   : > { %s4937_s30 = scalar_select %p4274_p7, 1, 0 }
 0x130   : > { %p4278_p9 = por %p327_p2, %p61_p11  ;;  %s2818_s17 = sshll.u32 %s4272_s19, 4 }
 0x131   : > { %s2944_s23 = sshll.u32 %s3873_s28, 8  ;;  %s4939_s24 = sld [smem:[#allocation36_spill]] }
 0x132   : > { %s4938_s1 = scalar_select %p4278_p9, 1, 0 }
 0x133   : > { %s507_s18 = scalar_lea.vmem [#allocation2], %s2818_s17  ;;  %p4293_p4 = pnand %p3175_p5, %p4259_p12 }
 0x134   : > { %s514_s13 = sshll.u32 %s507_s18, 4  ;;  %s504_s5 = scalar_lea.sflag [#allocation3], %s4272_s19  ;;  %s4289_s13 = int_to_ptr.vmem [resolvable:$true] %s514_s13 }
 0x135   : > { %p3689_p8 = pneg %p4293_p4 }
 0x137   : > { %s4287_s15 = scalar_lea.hbm %s4939_s24, %s2944_s23  ;;  %s3692_s22 = scalar_lea.hbm %s4939_s24, 512 }
 0x138   : > { %s3687_s12 = scalar_lea.hbm %s4287_s15, 256  ;;  %p3693_p11 = scmp.lt.u32.totalorder %s4287_s15, %s4939_s24 }
 0x139   : > { %p3688_p10 = scmp.ne.s32.totalorder %s4287_s15, %s3687_s12  ;;  %p3694_p12 = scmp.lt.u32.totalorder %s3692_s22, %s3687_s12 }
 0x13a   : > { %p3696_p0 = scmp.lt.u32.totalorder %s3687_s12, %s4287_s15 }
 0x13b   : > { %p3690_p1 = pnand %p3689_p8, %p3688_p10  ;;  %p3695_p13 = por %p3694_p12, %p3693_p11 }
 0x13d   : > { %p3691_p3 = pneg %p3690_p1  ;;  %p3697_p2 = por %p3696_p0, %p3695_p13 }
 0x13f   : > { %p3698_p5 = pnand %p3697_p2, %p3691_p3 }
 0x141   : > { %3701 = shalt.err (!%p3698_p5)
}
 0x142   : > { %s3702_s4 = scalar_lea.vmem %s4289_s13, 256  ;;  %s3889_s17 = smov [#allocation2]  }
 0x143   : > { %p3703_p10 = scmp.ne.s32.totalorder %s4289_s13, %s3702_s4  ;;  %s3707_s23 = sshll.u32 %s3889_s17, 4  ;;  %s3708_s23 = int_to_ptr.vmem [resolvable:$false] %s3707_s23 }
 0x144   : > { %s3709_s20 = scalar_lea.vmem %s3708_s23, 512  ;;  %p3710_p7 = scmp.lt.s32.totalorder %s4289_s13, %s3708_s23 }
 0x145   : > { %p3705_p1 = pnand %p3703_p10, %p3689_p8  ;;  %p3711_p11 = scmp.lt.s32.totalorder %s3709_s20, %s3702_s4 }
 0x147   : > { %p3706_p9 = pneg %p3705_p1  ;;  %p3712_p12 = por %p3711_p11, %p3710_p7 }
 0x149   : > { %p3713_p13 = pnand %p3712_p12, %p3706_p9 }
 0x14b   : > { %3716 = shalt.err (!%p3713_p13)
}
 0x14c   : > { %3154 = dma.hbm_to_vmem [thread:$0]  (!%p4293_p4), %s4287_s15, 256, %s4289_s13, %s504_s5, %s4933_s21, %s4933_s21, %s4932_s29  }
 0x14d   : > { %s2821_s12 = sshll.u32 %s3873_s28, 4  ;;  %s527_s22 = scalar_lea.vmem [#allocation5], %s4272_s19 }
 0x14e   : > { %s534_s4 = sshll.u32 %s527_s22, 4  ;;  %s4941_s23 = sld [smem:[#allocation37_spill]]  ;;  %s535_s4 = int_to_ptr.vmem [resolvable:$true] %s534_s4 }
 0x14f   : > { %s4942_s6 = sand.u32 1, %s3873_s28  }
 0x150   : > { %s525_s7 = scalar_lea.sflag [#allocation6], %s4942_s6 }
 0x154   : > { %s4334_s20 = scalar_lea.hbm %s4941_s23, %s2821_s12  ;;  %s3722_s21 = scalar_lea.hbm %s4941_s23, 32 }
 0x155   : > { %s3717_s8 = scalar_lea.hbm %s4334_s20, 16  ;;  %p3723_p0 = scmp.lt.u32.totalorder %s4334_s20, %s4941_s23 }
 0x156   : > { %p3718_p7 = scmp.ne.s32.totalorder %s4334_s20, %s3717_s8  ;;  %p3724_p2 = scmp.lt.u32.totalorder %s3722_s21, %s3717_s8 }
 0x157   : > { %p3726_p10 = scmp.lt.u32.totalorder %s3717_s8, %s4334_s20 }
 0x158   : > { %p3720_p9 = pnand %p3718_p7, %p3689_p8  ;;  %p3725_p5 = por %p3724_p2, %p3723_p0 }
 0x15a   : > { %p3721_p3 = pneg %p3720_p9  ;;  %p3727_p1 = por %p3726_p10, %p3725_p5 }
 0x15c   : > { %p3728_p11 = pnand %p3727_p1, %p3721_p3 }
 0x15e   : > { %3731 = shalt.err (!%p3728_p11)
}
 0x15f   : > { %s3732_s6 = scalar_lea.vmem %s535_s4, 16  ;;  %s3890_s13 = smov [#allocation5]  }
 0x160   : > { %p3733_p12 = scmp.ne.s32.totalorder %s535_s4, %s3732_s6  ;;  %s3737_s12 = sshll.u32 %s3890_s13, 4  ;;  %s3738_s12 = int_to_ptr.vmem [resolvable:$false] %s3737_s12 }
 0x161   : > { %s3739_s22 = scalar_lea.vmem %s3738_s12, 32  ;;  %p3740_p9 = scmp.lt.s32.totalorder %s535_s4, %s3738_s12 }
 0x162   : > { %p3735_p13 = pnand %p3733_p12, %p3689_p8  ;;  %p3741_p6 = scmp.lt.s32.totalorder %s3739_s22, %s3732_s6 }
 0x164   : > { %p3736_p7 = pneg %p3735_p13  ;;  %p3742_p0 = por %p3741_p6, %p3740_p9 }
 0x166   : > { %p3743_p2 = pnand %p3742_p0, %p3736_p7 }
 0x168   : > { %3746 = shalt.err (!%p3743_p2)
}
 0x169   : > { %3157 = dma.hbm_to_vmem [thread:$0]  (!%p4293_p4), %s4334_s20, 16, %s535_s4, %s525_s7  }
 0x16a   : > { %s4943_s8 = sld [smem:[#allocation35_spill]] }
 0x170   : > { %p4944_p3 = scmp.ne.s32.totalorder %s4943_s8, 0 }
 0x171   : > { %s4360_s18 = sand.u32 (!%p4944_p3), 1, %s3865_s26   ;;  %p4945_p6 = scmp.ne.s32.totalorder (!%p4944_p3), %s4936_s0, 0 }
 0x172   : > { %543 = sbr.rel (%p4944_p3) target bundleno = 3520 (0xdc0), region = 68  ;;  %s2823_s17 = sshll.u32 (!%p4944_p3), %s4360_s18, 4 }
 0x173   : > { %s546_s5 = scalar_lea.sflag (!%p4944_p3), [#allocation3], %s4360_s18  ;;  %s4364_s29 = scalar_lea.vmem (!%p4944_p3), [#allocation2], %s2823_s17 }
 0x179   : > { %3820 = dma.done.wait (%p4945_p6), %s546_s5, 256  }
 0x17a   : > { %3822 = vsyncadd (%p4945_p6), %s546_s5, 4294967040  ;;  %s554_s3 = sand.u32 1, %s3993_s14   ;;  %s557_s4 = scalar_lea.vmem [#allocation5], %s4360_s18 }
 0x17b   : > { %s555_s7 = scalar_lea.sflag [#allocation6], %s554_s3 }
 0x17c   : > { %3824 = dma.done.wait (%p4945_p6), %s555_s7, 16  }
 0x17d   : > { %3826 = vsyncadd (%p4945_p6), %s555_s7, 4294967280  ;;  %p4946_p4 = scmp.eq.s32.totalorder %s3993_s14, 0 }
 0x17f   : > { %3828 = dma.done.wait (%p4946_p4), [#allocation6], 256   ;;  %p4947_p8 = pmov %p4946_p4 }
 0x180   : > { %p4948_p5 = pmov %p4946_p4 }
 0x181   : > { %3830 = vsyncadd (%p4947_p8), [#allocation6], 4294967040 }
 0x182   : > { %3832 = dma.done.wait (%p4948_p5), [#allocation9], 4608   ;;  %p4949_p10 = pmov %p4946_p4 }
 0x183   : > { %p4950_p1 = pmov %p4946_p4 }
 0x184   : > { %3834 = vsyncadd (%p4949_p10), [#allocation9], 4294962688 }
 0x185   : > { %3836 = dma.done.wait (%p4950_p1), [#allocation12], 5632   ;;  %p4951_p11 = pmov %p4950_p1 }
 0x186   : > { %p4952_p12 = pmov %p4950_p1 }
 0x187   : > { %3838 = vsyncadd (%p4951_p11), [#allocation12], 4294961664 }
 0x188   : > { %3840 = dma.done.wait (%p4952_p12), [#allocation15], 3328   ;;  %p4953_p13 = pmov %p4950_p1 }
 0x189   : > { %p4954_p7 = pmov %p4950_p1 }
 0x18a   : > { %3842 = vsyncadd (%p4953_p13), [#allocation15], 4294963968 }
 0x18b   : > { %3844 = dma.done.wait (%p4954_p7), [#allocation18], 640   ;;  %p4955_p9 = pmov %p4950_p1 }
 0x18c   : > { %p4956_p0 = pmov %p4950_p1 }
 0x18d   : > { %3846 = vsyncadd (%p4955_p9), [#allocation18], 4294966656 }
 0x18e   : > { %3848 = dma.done.wait (%p4956_p0), [#allocation21], 256   ;;  %p4957_p2 = pmov %p4956_p0 }
 0x18f   : > { %v3891_v0 = vmov 0   ;;  %vm730_vm0 = vcmask 1043456   ;;  %v649_v1 = vld [vmem:[%s4364_s29] sm:$0xff]  ;;  %vm723_vm1 = vcmask 64512   ;;  %s4404_s0 = scalar_lea.vmem [#allocation22], %s2823_s17  ;;  %s3892_s20 = smov 2   ;;  %v658_v40 = vlaneseq }
 0x190   : > { %3850 = vsyncadd (%p4957_p2), [#allocation21], 4294967040  ;;  %3242 = vset.pattern.permute.xlu0 %v3891_v0  ;;  %3243 = vset.pattern.permute.xlu1 %v3891_v0  ;;  %v688_v2 = vpack.c.bf16 %v649_v1, %v649_v1  ;;  %2549 = vst [vmem:[%s4404_s0] sm:$0xff] %v649_v1  ;;  %v3244_v3 = vld [vmem:[#allocation7] sm:$0xff]   ;;  %v689_v4 = vld [vmem:[#allocation8] sm:$0xff]  ;;  %s3893_s21 = smov 1   ;;  %s3894_s19 = smov 127  }
 0x191   : > { %950 = vmatprep.subr.bf16.mxu1 %v3891_v0  ;;  %v691_v5 = vld [vmem:[#allocation8 + $0x10] sm:$0xff]  ;;  %2979 = vmatprep.mubr.msk.bf16.mxu0 %vm723_vm1, %v3244_v3  ;;  %v3245_v7 = vld [vmem:[#allocation7 + $0x8] sm:$0xff]   ;;  %v690_v8 = vld [vmem:[#allocation8 + $0x8] sm:$0xff]  ;;  %s3895_s15 = smov 126   ;;  %vm937_vm2 = vcmask 261120   ;;  %v659_v41 = vand.u32 127, %v658_v40 }
 0x192   : > { %3071 = vmatprep.subr.msk.bf16.mxu0 %vm730_vm0, %v688_v2  ;;  %v732_v6 = vsel %vm730_vm0, %v688_v2, 0  ;;  %695 = vperm.xlu0 %3242, %v689_v4   ;;  %v692_v9 = vld [vmem:[#allocation8 + $0x18] sm:$0xff]  ;;  %v4411_v13 = vld [vmem:[%s557_s4] ss:$0 sm:$0xff]  ;;  %v857_v27 = vld [vmem:[#allocation11 + $0x20] sm:$0xff]  ;;  %v3896_v43 = vmov 0.0  }
 0x193   : > { %2978 = vmatpush3.bf16.msra.mxu0 %v732_v6  ;;  %705 = vperm.xlu1 %3243, %v691_v5   ;;  %v3248_v28 = vld [vmem:[#allocation10 + $0x4] ss:$8 sps:$4 sm:$0xff]   ;;  %v859_v30 = vld [vmem:[#allocation11 + $0x30] sm:$0xff]  ;;  %v860_v31 = vld [vmem:[#allocation11 + $0x38] sm:$0xff]  ;;  %v660_v42 = vadd.s32 4294967294, %v659_v41  ;;  %v666_v46 = vadd.s32 4294967295, %v659_v41 }
 0x194   : > { %v858_v29 = vld [vmem:[#allocation11 + $0x28] sm:$0xff]  ;;  %2852 = vmatprep.mubr.msk.bf16.mxu1 %vm937_vm2, %v3248_v28  ;;  %v853_v32 = vld [vmem:[#allocation11] sm:$0xff]  ;;  %v855_v34 = vld [vmem:[#allocation11 + $0x10] sm:$0xff]  ;;  %v672_v4 = vadd.s32 1, %v659_v41  ;;  %vm3897_vm7 = vmmov 0   ;;  %s2941_s6 = sshll.u32 %s3993_s14, 4 }
 0x195   : > { %v854_v33 = vld [vmem:[#allocation11 + $0x8] sm:$0xff]  ;;  %v856_v35 = vld [vmem:[#allocation11 + $0x18] sm:$0xff]  ;;  %v1057_v36 = vld [vmem:[#allocation14] sm:$0xff]  ;;  %vm661_vm3 = vcmp.ge.s32.totalorder %v660_v42, 0  ;;  %vm667_vm4 = vcmp.ge.s32.totalorder %v666_v46, 0  ;;  %s647_s13 = scalar_lea.vmem [#allocation23], %s4360_s18 }
 0x196   : > { %2980 = vmatmul.mubr.msk.bf16.vlgmr.msra.gmra.mrb[0].mxu0 %vm723_vm1, %v3245_v7  ;;  %700 = vperm.xlu0 %3242, %v690_v8   ;;  %v1058_v37 = vld [vmem:[#allocation14 + $0x8] sm:$0xff]  ;;  %v1059_v38 = vld [vmem:[#allocation14 + $0x10] sm:$0xff]  ;;  %v1060_v39 = vld [vmem:[#allocation14 + $0x18] sm:$0xff]  ;;  %v4459_v44 = vsel %vm661_vm3, 1.0, %v3896_v43  ;;  %v4466_v55 = vsel %vm667_vm4, 1.0, %v3896_v43  ;;  %vm674_vm5 = vcmp.lt.s32.totalorder %v672_v4, 128 }
 0x197   : > { %710 = vperm.xlu1 %3243, %v692_v9   ;;  %v4479_v9 = vsel %vm674_vm5, 1.0, %v3896_v43  ;;  %v3255_v40 = vld [vmem:[#allocation10 + $0x34] ss:$8 sps:$4 sm:$0xff]   ;;  %v3258_v42 = vld [vmem:[#allocation13] sm:$0xff]   ;;  %s2592_s12 = sshll.u32 %s647_s13, 4  ;;  %s4958_s17 = sld [smem:[#allocation46_spill]]  ;;  %s4795_s12 = int_to_ptr.vmem [resolvable:$true] %s2592_s12 }
 0x198   : > { %2987 = vmatprep.mubr.msk.bf16.mxu0 %vm937_vm2, %v3258_v42  ;;  %s2576_s3 = sshll.u32 %s4404_s0, 4  ;;  %s2945_s7 = sshll.u32 %s3993_s14, 8  ;;  %s4823_s3 = int_to_ptr.vmem [resolvable:$true] %s2576_s3 }
 0x199   : > { %p4959_p6 = scmp.ne.s32.totalorder %s4937_s30, 0 }
 0x19d   : > { %s4793_s5 = scalar_lea.hbm %s4958_s17, %s2941_s6 }
 0x211   : > { %v696_v10 = vpop.permute.xlu0 %695 }
 0x212   : > { %v706_v11 = vpop.permute.xlu1 %705 }
 0x215   : > { %v701_v15 = vpop.permute.xlu0 %700 }
 0x216   : > { %v711_v18 = vpop.permute.xlu1 %710 }
 0x269   : > { %v2981_v12 = vpop.f32.mrb[0].mxu0 }
 0x26a   : > { %v768_v14 = vpop.f32.mrb[1].mxu0  ;;  %v777_v20 = vadd.f32 %v2981_v12, %v706_v11  ;;  %v678_v12 = vadd.s32 2, %v659_v41  ;;  %v3257_v41 = vld [vmem:[#allocation10 + $0x30] ss:$8 sps:$4 sm:$0xff]  }
 0x26b   : > { %v769_v16 = vadd.f32 %v768_v14, %v696_v10  ;;  %v2982_v17 = vpop.f32.mrb[2].mxu0 }
 0x26c   : > { %v771_v19 = vpop.f32.mrb[3].mxu0  ;;  %v780_v23 = vadd.f32 %v2982_v17, %v711_v18  ;;  %v4422_v25 = vmul.f32 %v4411_v13, %v777_v20  ;;  %vm680_vm6 = vcmp.lt.s32.totalorder %v678_v12, 128 }
 0x26d   : > { %v4414_v21 = vmul.f32 %v4411_v13, %v769_v16  ;;  %v772_v22 = vadd.f32 %v771_v19, %v701_v15 }
 0x26e   : > { %v4427_v26 = vmul.f32 %v4411_v13, %v780_v23 }
 0x26f   : > { %v4417_v24 = vmul.f32 %v4411_v13, %v772_v22  ;;  %787 = vrot.lane.b32.xlu0 %v4414_v21, %s3892_s20  ;;  %v4490_v22 = vsel %vm680_vm6, 1.0, %v3896_v43 }
 0x270   : > { %v840_v14 = vpack.c.bf16 %v4427_v26, %v4422_v25 }
 0x271   : > { %789 = vrot.lane.b32.xlu1 %v4417_v24, %s3892_s20  ;;  %v839_v7 = vpack.c.bf16 %v4417_v24, %v4414_v21 }
 0x273   : > { %791 = vrot.lane.b32.xlu0 %v4422_v25, %s3892_s20 }
 0x275   : > { %793 = vrot.lane.b32.xlu1 %v4427_v26, %s3892_s20 }
 0x277   : > { %799 = vrot.lane.b32.xlu0 %v4414_v21, %s3893_s21 }
 0x279   : > { %801 = vrot.lane.b32.xlu1 %v4417_v24, %s3893_s21 }
 0x27b   : > { %803 = vrot.lane.b32.xlu0 %v4422_v25, %s3893_s21 }
 0x27d   : > { %805 = vrot.lane.b32.xlu1 %v4427_v26, %s3893_s21 }
 0x27f   : > { %811 = vrot.lane.b32.xlu0 %v4414_v21, %s3894_s19 }
 0x281   : > { %813 = vrot.lane.b32.xlu1 %v4417_v24, %s3894_s19 }
 0x283   : > { %815 = vrot.lane.b32.xlu0 %v4422_v25, %s3894_s19 }
 0x285   : > { %817 = vrot.lane.b32.xlu1 %v4427_v26, %s3894_s19 }
 0x287   : > { %823 = vrot.lane.b32.xlu0 %v4414_v21, %s3895_s15 }
 0x289   : > { %825 = vrot.lane.b32.xlu1 %v4417_v24, %s3895_s15 }
 0x28b   : > { %827 = vrot.lane.b32.xlu0 %v4422_v25, %s3895_s15 }
 0x28d   : > { %829 = vrot.lane.b32.xlu1 %v4427_v26, %s3895_s15 }
 0x28f   : > { %883 = vperm.xlu0 %3242, %v857_v27  }
 0x291   : > { %888 = vperm.xlu1 %3243, %v858_v29  }
 0x293   : > { %893 = vperm.xlu0 %3242, %v859_v30  }
 0x295   : > { %898 = vperm.xlu1 %3243, %v860_v31  }
 0x297   : > { %863 = vperm.xlu0 %3242, %v853_v32  }
 0x299   : > { %868 = vperm.xlu1 %3243, %v854_v33  }
 0x29b   : > { %873 = vperm.xlu0 %3242, %v855_v34  }
 0x29d   : > { %878 = vperm.xlu1 %3243, %v856_v35   ;;  %v3246_v35 = vld [vmem:[#allocation10] ss:$8 sps:$4 sm:$0xff]  }
 0x29f   : > { %1067 = vperm.xlu0 %3242, %v1057_v36   ;;  %v3249_v36 = vld [vmem:[#allocation10 + $0x14] ss:$8 sps:$4 sm:$0xff]  }
 0x2a1   : > { %1072 = vperm.xlu1 %3243, %v1058_v37   ;;  %v3251_v37 = vld [vmem:[#allocation10 + $0x10] ss:$8 sps:$4 sm:$0xff]  }
 0x2a3   : > { %1077 = vperm.xlu0 %3242, %v1059_v38   ;;  %v3252_v38 = vld [vmem:[#allocation10 + $0x24] ss:$8 sps:$4 sm:$0xff]  }
 0x2a5   : > { %1082 = vperm.xlu1 %3243, %v1060_v39   ;;  %v3254_v39 = vld [vmem:[#allocation10 + $0x20] ss:$8 sps:$4 sm:$0xff]  }
 0x2e1   : > { %v788_v45 = vpop.permute.xlu0 %787 }
 0x2e2   : > { %v795_v48 = vmul.f32 %v4459_v44, %v788_v45 }
 0x2e3   : > { %v790_v47 = vpop.permute.xlu1 %789 }
 0x2e4   : > { %v796_v49 = vmul.f32 %v4459_v44, %v790_v47 }
 0x2e5   : > { %v792_v50 = vpop.permute.xlu0 %791 }
 0x2e6   : > { %v835_v51 = vpack.c.bf16 %v796_v49, %v795_v48  ;;  %v797_v53 = vmul.f32 %v4459_v44, %v792_v50 }
 0x2e7   : > { %v794_v52 = vpop.permute.xlu1 %793 }
 0x2e8   : > { %v798_v54 = vmul.f32 %v4459_v44, %v794_v52  ;;  %951 = vmatpush1.bf16.msra.mxu1 %v835_v51 }
 0x2e9   : > { %v800_v56 = vpop.permute.xlu0 %799  ;;  %952 = vmatprep.subr.bf16.mxu1 %v3891_v0 }
 0x2ea   : > { %v836_v57 = vpack.c.bf16 %v798_v54, %v797_v53  ;;  %v807_v59 = vmul.f32 %v4466_v55, %v800_v56 }
 0x2eb   : > { %v802_v58 = vpop.permute.xlu1 %801 }
 0x2ec   : > { %v808_v60 = vmul.f32 %v4466_v55, %v802_v58  ;;  %953 = vmatpush1.bf16.msra.mxu1 %v836_v57 }
 0x2ed   : > { %v804_v61 = vpop.permute.xlu0 %803  ;;  %954 = vmatprep.subr.bf16.mxu1 %v3891_v0 }
 0x2ee   : > { %v837_v62 = vpack.c.bf16 %v808_v60, %v807_v59  ;;  %v809_v1 = vmul.f32 %v4466_v55, %v804_v61 }
 0x2ef   : > { %v806_v63 = vpop.permute.xlu1 %805 }
 0x2f0   : > { %v810_v2 = vmul.f32 %v4466_v55, %v806_v63  ;;  %955 = vmatpush1.bf16.msra.mxu1 %v837_v62 }
 0x2f1   : > { %956 = vmatprep.subr.bf16.mxu1 %v3891_v0  ;;  %v812_v5 = vpop.permute.xlu0 %811 }
 0x2f2   : > { %v838_v3 = vpack.c.bf16 %v810_v2, %v809_v1  ;;  %v819_v15 = vmul.f32 %v4479_v9, %v812_v5 }
 0x2f3   : > { %v814_v6 = vpop.permute.xlu1 %813 }
 0x2f4   : > { %957 = vmatpush1.bf16.msra.mxu1 %v838_v3  ;;  %v820_v11 = vmul.f32 %v4479_v9, %v814_v6 }
 0x2f5   : > { %958 = vmatprep.subr.bf16.mxu1 %v3891_v0  ;;  %v816_v10 = vpop.permute.xlu0 %815 }
 0x2f6   : > { %v841_v17 = vpack.c.bf16 %v820_v11, %v819_v15  ;;  %v821_v20 = vmul.f32 %v4479_v9, %v816_v10 }
 0x2f7   : > { %v818_v8 = vpop.permute.xlu1 %817 }
 0x2f8   : > { %959 = vmatpush1.bf16.msra.mxu1 %v839_v7  ;;  %v822_v18 = vmul.f32 %v4479_v9, %v818_v8 }
 0x2f9   : > { %960 = vmatprep.subr.bf16.mxu1 %v3891_v0  ;;  %v824_v19 = vpop.permute.xlu0 %823 }
 0x2fa   : > { %v842_v23 = vpack.c.bf16 %v822_v18, %v821_v20  ;;  %v831_v29 = vmul.f32 %v4490_v22, %v824_v19 }
 0x2fb   : > { %v826_v16 = vpop.permute.xlu1 %825 }
 0x2fc   : > { %961 = vmatpush1.bf16.msra.mxu1 %v840_v14  ;;  %v832_v27 = vmul.f32 %v4490_v22, %v826_v16 }
 0x2fd   : > { %962 = vmatprep.subr.bf16.mxu1 %v3891_v0  ;;  %v828_v30 = vpop.permute.xlu0 %827 }
 0x2fe   : > { %v843_v31 = vpack.c.bf16 %v832_v27, %v831_v29  ;;  %v833_v33 = vmul.f32 %v4490_v22, %v828_v30 }
 0x2ff   : > { %v830_v28 = vpop.permute.xlu1 %829 }
 0x300   : > { %963 = vmatpush1.bf16.msra.mxu1 %v841_v17  ;;  %v834_v32 = vmul.f32 %v4490_v22, %v830_v28 }
 0x301   : > { %964 = vmatprep.subr.bf16.mxu1 %v3891_v0 }
 0x302   : > { %v844_v34 = vpack.c.bf16 %v834_v32, %v833_v33 }
 0x304   : > { %965 = vmatpush1.bf16.msra.mxu1 %v842_v23 }
 0x305   : > { %966 = vmatprep.subr.bf16.mxu1 %v3891_v0 }
 0x308   : > { %967 = vmatpush1.bf16.msra.mxu1 %v843_v31 }
 0x309   : > { %968 = vmatprep.subr.bf16.mxu1 %v3891_v0 }
 0x30c   : > { %969 = vmatpush1.bf16.msra.mxu1 %v844_v34 }
 0x30d   : > { %1808 = vmatprep.subr.bf16.mxu1 %v3891_v0 }
 0x30e   : > { %v884_v53 = vpop.permute.xlu0 %883 }
 0x30f   : > { %983 = vmatmul.mubr.bf16.vlgmr.msra.gmra.mrb[0].mxu1 %v3246_v35 }
 0x310   : > { %2853 = vmatprep.mubr.msk.bf16.mxu1 %vm937_vm2, %v3249_v36  ;;  %v889_v58 = vpop.permute.xlu1 %888 }
 0x312   : > { %v894_v1 = vpop.permute.xlu0 %893 }
 0x314   : > { %v899_v2 = vpop.permute.xlu1 %898 }
 0x316   : > { %v864_v11 = vpop.permute.xlu0 %863 }
 0x317   : > { %991 = vmatmul.mubr.bf16.gmra.mrb[4].mxu1 %v3251_v37 }
 0x318   : > { %2854 = vmatprep.mubr.msk.bf16.mxu1 %vm937_vm2, %v3252_v38  ;;  %v869_v15 = vpop.permute.xlu1 %868 }
 0x31a   : > { %v874_v23 = vpop.permute.xlu0 %873 }
 0x31c   : > { %v879_v28 = vpop.permute.xlu1 %878 }
 0x31f   : > { %999 = vmatmul.mubr.bf16.gmra.mrb[8].mxu1 %v3254_v39 }
 0x320   : > { %2855 = vmatprep.mubr.msk.bf16.mxu1 %vm937_vm2, %v3255_v40 }
 0x327   : > { %1007 = vmatmul.mubr.bf16.gmra.mrb[12].mxu1 %v3257_v41 }
 0x3e2   : > { %v984_v45 = vpop.f32.mrb[0].mxu1 }
 0x3e3   : > { %v986_v46 = vpop.f32.mrb[1].mxu1  ;;  %v985_v12 = vadd.f32 %v984_v45, %v864_v11  ;;  %v1288_v11 = vld [vmem:[#allocation11 + $0x70] sm:$0xff] }
 0x3e4   : > { %v987_v47 = vpop.f32.mrb[2].mxu1 }
 0x3e5   : > { %v989_v48 = vpop.f32.mrb[3].mxu1  ;;  %v988_v17 = vadd.f32 %v987_v47, %v869_v15  ;;  %v1283_v15 = vld [vmem:[#allocation11 + $0x48] sm:$0xff] }
 0x3ea   : > { %v992_v49 = vpop.f32.mrb[4].mxu1 }
 0x3eb   : > { %v994_v50 = vpop.f32.mrb[5].mxu1  ;;  %v993_v27 = vadd.f32 %v992_v49, %v874_v23  ;;  %v1490_v23 = vld [vmem:[#allocation14 + $0x58] sm:$0xff] }
 0x3ec   : > { %v995_v51 = vpop.f32.mrb[6].mxu1  ;;  %v3259_v50 = vld [vmem:[#allocation13 + $0x8] sm:$0xff]  }
 0x3ed   : > { %v997_v52 = vpop.f32.mrb[7].mxu1  ;;  %v996_v30 = vadd.f32 %v995_v51, %v879_v28  ;;  %v1068_v51 = vpop.permute.xlu0 %1067 }
 0x3ee   : > { %v1073_v52 = vpop.permute.xlu1 %1072 }
 0x3f2   : > { %v1000_v54 = vpop.f32.mrb[8].mxu1 }
 0x3f3   : > { %v1001_v56 = vadd.f32 %v1000_v54, %v884_v53  ;;  %v1002_v57 = vpop.f32.mrb[9].mxu1  ;;  %v1078_v54 = vpop.permute.xlu0 %1077 }
 0x3f4   : > { %v1003_v59 = vpop.f32.mrb[10].mxu1 }
 0x3f5   : > { %v2856_v60 = vmul.f32 -1.442695, %v1001_v56  ;;  %v1004_v61 = vadd.f32 %v1003_v59, %v889_v58  ;;  %v1005_v62 = vpop.f32.mrb[11].mxu1 }
 0x3f7   : > { %3308 = vpow2.f32 %v2856_v60  ;;  %v2857_v63 = vmul.f32 -1.442695, %v1004_v61  ;;  %v1083_v60 = vpop.permute.xlu1 %1082 }
 0x3f9   : > { %3310 = vpow2.f32 %v2857_v63 }
 0x3fa   : > { %v1008_v3 = vpop.f32.mrb[12].mxu1 }
 0x3fb   : > { %v1009_v4 = vadd.f32 %v1008_v3, %v894_v1  ;;  %v1010_v5 = vpop.f32.mrb[13].mxu1 }
 0x3fc   : > { %v1011_v6 = vpop.f32.mrb[14].mxu1 }
 0x3fd   : > { %v2858_v7 = vmul.f32 -1.442695, %v1009_v4  ;;  %v1012_v8 = vadd.f32 %v1011_v6, %v899_v2  ;;  %v1013_v10 = vpop.f32.mrb[15].mxu1 }
 0x3fe   : > { %v1287_v10 = vld [vmem:[#allocation11 + $0x68] sm:$0xff] }
 0x3ff   : > { %3312 = vpow2.f32 %v2858_v7  ;;  %v2859_v14 = vmul.f32 -1.442695, %v1012_v8  ;;  %v3264_v8 = vld [vmem:[#allocation10 + $0x44] ss:$8 sps:$4 sm:$0xff]  }
 0x401   : > { %v3309_v16 = vpop.eup %3308  ;;  %3314 = vpow2.f32 %v2859_v14  ;;  %v1282_v14 = vld [vmem:[#allocation11 + $0x40] sm:$0xff] }
 0x402   : > { %v1031_v18 = vadd.f32 1.0, %v3309_v16  ;;  %3316 = vtanh.f32 %v985_v12  ;;  %v1289_v12 = vld [vmem:[#allocation11 + $0x78] sm:$0xff]  ;;  %v1284_v16 = vld [vmem:[#allocation11 + $0x50] sm:$0xff] }
 0x403   : > { %v3311_v19 = vpop.eup %3310 }
 0x404   : > { %3318 = vrcp.f32 %v1031_v18  ;;  %v1032_v20 = vadd.f32 1.0, %v3311_v19  ;;  %v1487_v18 = vld [vmem:[#allocation14 + $0x40] sm:$0xff]  ;;  %v1488_v19 = vld [vmem:[#allocation14 + $0x48] sm:$0xff] }
 0x405   : > { %3320 = vtanh.f32 %v988_v17  ;;  %v1285_v17 = vld [vmem:[#allocation11 + $0x58] sm:$0xff] }
 0x406   : > { %3322 = vrcp.f32 %v1032_v20  ;;  %v1489_v20 = vld [vmem:[#allocation14 + $0x50] sm:$0xff] }
 0x407   : > { %3324 = vtanh.f32 %v993_v27 }
 0x409   : > { %v3313_v29 = vpop.eup %3312 }
 0x40a   : > { %v1033_v31 = vadd.f32 1.0, %v3313_v29 }
 0x40b   : > { %v3315_v32 = vpop.eup %3314 }
 0x40c   : > { %3326 = vrcp.f32 %v1033_v31  ;;  %v1034_v33 = vadd.f32 1.0, %v3315_v32  ;;  %v3317_v34 = vpop.eup %3316 }
 0x40d   : > { %3328 = vtanh.f32 %v996_v30 }
 0x40e   : > { %v3319_v35 = vpop.eup %3318  ;;  %3330 = vrcp.f32 %v1034_v33 }
 0x40f   : > { %v3321_v36 = vpop.eup %3320  ;;  %v1043_v37 = vmul.f32 %v3319_v35, %v3317_v34 }
 0x410   : > { %v3323_v38 = vpop.eup %3322 }
 0x411   : > { %v1044_v39 = vmul.f32 %v3323_v38, %v3321_v36  ;;  %v3325_v41 = vpop.eup %3324 }
 0x413   : > { %v1047_v40 = vpack.c.bf16 %v1044_v39, %v1043_v37 }
 0x415   : > { %2983 = vmatprep.subr.bf16.mxu0 %v1047_v40 }
 0x416   : > { %v3327_v42 = vpop.eup %3326  ;;  %2984 = vmatpush3.bf16.msra.mxu0 %v1047_v40 }
 0x417   : > { %v3329_v45 = vpop.eup %3328  ;;  %v1045_v46 = vmul.f32 %v3327_v42, %v3325_v41 }
 0x418   : > { %v3331_v47 = vpop.eup %3330 }
 0x419   : > { %v1046_v48 = vmul.f32 %v3331_v47, %v3329_v45 }
 0x41b   : > { %v1048_v49 = vpack.c.bf16 %v1046_v48, %v1045_v46 }
 0x41d   : > { %2985 = vmatprep.subr.bf16.mxu0 %v1048_v49 }
 0x41e   : > { %2986 = vmatpush3.bf16.msra.mxu0 %v1048_v49 }
 0x41f   : > { %1378 = vmatprep.subr.bf16.mxu0 %v3891_v0 }
 0x421   : > { %2988 = vmatmul.mubr.msk.bf16.vlgmr.msra.gmra.mrb[4].mxu0 %vm937_vm2, %v3259_v50 }
 0x4f4   : > { %v2989_v53 = vpop.f32.mrb[4].mxu0 }
 0x4f5   : > { %v1171_v56 = vpop.f32.mrb[5].mxu0  ;;  %v1180_v57 = vadd.f32 %v2989_v53, %v1078_v54 }
 0x4f6   : > { %v1172_v58 = vadd.f32 %v1171_v56, %v1068_v51  ;;  %v2990_v59 = vpop.f32.mrb[6].mxu0 }
 0x4f7   : > { %v1174_v61 = vpop.f32.mrb[7].mxu0  ;;  %v1183_v63 = vadd.f32 %v2990_v59, %v1083_v60  ;;  %v1204_v2 = vadd.f32 %v1180_v57, %v4422_v25  ;;  %v3261_v25 = vld [vmem:[#allocation13 + $0x18] sm:$0xff]  }
 0x4f8   : > { %v1202_v62 = vadd.f32 %v1172_v58, %v4414_v21  ;;  %v1175_v1 = vadd.f32 %v1174_v61, %v1073_v52 }
 0x4f9   : > { %v1205_v5 = vadd.f32 %v1183_v63, %v4427_v26  ;;  %v4519_v7 = vmul.f32 %v4411_v13, %v1204_v2  ;;  %v1286_v26 = vld [vmem:[#allocation11 + $0x60] sm:$0xff] }
 0x4fa   : > { %v4509_v3 = vmul.f32 %v4411_v13, %v1202_v62  ;;  %v1203_v4 = vadd.f32 %v1175_v1, %v4417_v24  ;;  %v3260_v24 = vld [vmem:[#allocation13 + $0x10] sm:$0xff]  }
 0x4fb   : > { %v4524_v21 = vmul.f32 %v4411_v13, %v1205_v5  ;;  %2991 = vmatprep.mubr.msk.bf16.mxu0 %vm937_vm2, %v3260_v24 }
 0x4fc   : > { %v4514_v6 = vmul.f32 %v4411_v13, %v1203_v4  ;;  %1214 = vrot.lane.b32.xlu0 %v4509_v3, %s3892_s20  ;;  %2992 = vmatmul.mubr.msk.bf16.gmra.mrb[8].mxu0 %vm937_vm2, %v3261_v25 }
 0x4fd   : > { %2876 = vmatprep.mubr.msk.bf16.mxu0 %vm937_vm2, %v3264_v8  ;;  %v1267_v56 = vpack.c.bf16 %v4524_v21, %v4519_v7 }
 0x4fe   : > { %1216 = vrot.lane.b32.xlu1 %v4514_v6, %s3892_s20  ;;  %v1266_v51 = vpack.c.bf16 %v4514_v6, %v4509_v3 }
 0x500   : > { %1218 = vrot.lane.b32.xlu0 %v4519_v7, %s3892_s20 }
 0x502   : > { %1220 = vrot.lane.b32.xlu1 %v4524_v21, %s3892_s20 }
 0x504   : > { %1226 = vrot.lane.b32.xlu0 %v4509_v3, %s3893_s21 }
 0x506   : > { %1228 = vrot.lane.b32.xlu1 %v4514_v6, %s3893_s21 }
 0x508   : > { %1230 = vrot.lane.b32.xlu0 %v4519_v7, %s3893_s21 }
 0x50a   : > { %1232 = vrot.lane.b32.xlu1 %v4524_v21, %s3893_s21 }
 0x50c   : > { %1238 = vrot.lane.b32.xlu0 %v4509_v3, %s3894_s19 }
 0x50e   : > { %1240 = vrot.lane.b32.xlu1 %v4514_v6, %s3894_s19 }
 0x510   : > { %1242 = vrot.lane.b32.xlu0 %v4519_v7, %s3894_s19 }
 0x512   : > { %1244 = vrot.lane.b32.xlu1 %v4524_v21, %s3894_s19 }
 0x514   : > { %1250 = vrot.lane.b32.xlu0 %v4509_v3, %s3895_s15 }
 0x516   : > { %1252 = vrot.lane.b32.xlu1 %v4514_v6, %s3895_s15 }
 0x518   : > { %1254 = vrot.lane.b32.xlu0 %v4519_v7, %s3895_s15 }
 0x51a   : > { %1256 = vrot.lane.b32.xlu1 %v4524_v21, %s3895_s15 }
 0x51c   : > { %1312 = vperm.xlu0 %3242, %v1286_v26  }
 0x51e   : > { %1317 = vperm.xlu1 %3243, %v1287_v10   ;;  %v3262_v10 = vld [vmem:[#allocation10 + $0x40] ss:$8 sps:$4 sm:$0xff]  }
 0x520   : > { %1322 = vperm.xlu0 %3242, %v1288_v11   ;;  %v3265_v11 = vld [vmem:[#allocation10 + $0x54] ss:$8 sps:$4 sm:$0xff]  }
 0x522   : > { %1327 = vperm.xlu1 %3243, %v1289_v12   ;;  %v3267_v12 = vld [vmem:[#allocation10 + $0x50] ss:$8 sps:$4 sm:$0xff]  }
 0x524   : > { %1292 = vperm.xlu0 %3242, %v1282_v14   ;;  %v3268_v14 = vld [vmem:[#allocation10 + $0x64] ss:$8 sps:$4 sm:$0xff]  }
 0x526   : > { %1297 = vperm.xlu1 %3243, %v1283_v15   ;;  %v3270_v15 = vld [vmem:[#allocation10 + $0x60] ss:$8 sps:$4 sm:$0xff]  }
 0x528   : > { %1302 = vperm.xlu0 %3242, %v1284_v16   ;;  %v3271_v16 = vld [vmem:[#allocation10 + $0x74] ss:$8 sps:$4 sm:$0xff]  }
 0x52a   : > { %1307 = vperm.xlu1 %3243, %v1285_v17   ;;  %v3273_v17 = vld [vmem:[#allocation10 + $0x70] ss:$8 sps:$4 sm:$0xff]  }
 0x52c   : > { %1497 = vperm.xlu0 %3242, %v1487_v18   ;;  %v3274_v18 = vld [vmem:[#allocation13 + $0x20] sm:$0xff]  }
 0x52e   : > { %1502 = vperm.xlu1 %3243, %v1488_v19  }
 0x530   : > { %1507 = vperm.xlu0 %3242, %v1489_v20  }
 0x532   : > { %1512 = vperm.xlu1 %3243, %v1490_v23  }
 0x56e   : > { %v1215_v27 = vpop.permute.xlu0 %1214 }
 0x56f   : > { %v1222_v29 = vmul.f32 %v4459_v44, %v1215_v27 }
 0x570   : > { %v1217_v28 = vpop.permute.xlu1 %1216 }
 0x571   : > { %v1223_v30 = vmul.f32 %v4459_v44, %v1217_v28 }
 0x572   : > { %v1219_v31 = vpop.permute.xlu0 %1218 }
 0x573   : > { %v1262_v32 = vpack.c.bf16 %v1223_v30, %v1222_v29  ;;  %v1224_v34 = vmul.f32 %v4459_v44, %v1219_v31 }
 0x574   : > { %v1221_v33 = vpop.permute.xlu1 %1220 }
 0x575   : > { %v1225_v35 = vmul.f32 %v4459_v44, %v1221_v33  ;;  %1379 = vmatpush1.bf16.msra.mxu0 %v1262_v32 }
 0x576   : > { %v1227_v36 = vpop.permute.xlu0 %1226  ;;  %1380 = vmatprep.subr.bf16.mxu0 %v3891_v0 }
 0x577   : > { %v1263_v37 = vpack.c.bf16 %v1225_v35, %v1224_v34  ;;  %v1234_v39 = vmul.f32 %v4466_v55, %v1227_v36 }
 0x578   : > { %v1229_v38 = vpop.permute.xlu1 %1228 }
 0x579   : > { %v1235_v40 = vmul.f32 %v4466_v55, %v1229_v38  ;;  %1381 = vmatpush1.bf16.msra.mxu0 %v1263_v37 }
 0x57a   : > { %v1231_v41 = vpop.permute.xlu0 %1230  ;;  %1382 = vmatprep.subr.bf16.mxu0 %v3891_v0 }
 0x57b   : > { %v1264_v42 = vpack.c.bf16 %v1235_v40, %v1234_v39  ;;  %v1236_v46 = vmul.f32 %v4466_v55, %v1231_v41 }
 0x57c   : > { %v1233_v45 = vpop.permute.xlu1 %1232 }
 0x57d   : > { %v1237_v47 = vmul.f32 %v4466_v55, %v1233_v45  ;;  %1383 = vmatpush1.bf16.msra.mxu0 %v1264_v42 }
 0x57e   : > { %1384 = vmatprep.subr.bf16.mxu0 %v3891_v0  ;;  %v1239_v49 = vpop.permute.xlu0 %1238 }
 0x57f   : > { %v1265_v48 = vpack.c.bf16 %v1237_v47, %v1236_v46  ;;  %v1246_v57 = vmul.f32 %v4479_v9, %v1239_v49 }
 0x580   : > { %v1241_v50 = vpop.permute.xlu1 %1240 }
 0x581   : > { %1385 = vmatpush1.bf16.msra.mxu0 %v1265_v48  ;;  %v1247_v54 = vmul.f32 %v4479_v9, %v1241_v50 }
 0x582   : > { %1386 = vmatprep.subr.bf16.mxu0 %v3891_v0  ;;  %v1243_v53 = vpop.permute.xlu0 %1242 }
 0x583   : > { %v1268_v59 = vpack.c.bf16 %v1247_v54, %v1246_v57  ;;  %v1248_v62 = vmul.f32 %v4479_v9, %v1243_v53 }
 0x584   : > { %v1245_v52 = vpop.permute.xlu1 %1244 }
 0x585   : > { %1387 = vmatpush1.bf16.msra.mxu0 %v1266_v51  ;;  %v1249_v60 = vmul.f32 %v4479_v9, %v1245_v52 }
 0x586   : > { %1388 = vmatprep.subr.bf16.mxu0 %v3891_v0  ;;  %v1251_v61 = vpop.permute.xlu0 %1250 }
 0x587   : > { %v1269_v63 = vpack.c.bf16 %v1249_v60, %v1248_v62  ;;  %v1258_v4 = vmul.f32 %v4490_v22, %v1251_v61 }
 0x588   : > { %v1253_v58 = vpop.permute.xlu1 %1252 }
 0x589   : > { %1389 = vmatpush1.bf16.msra.mxu0 %v1267_v56  ;;  %v1259_v1 = vmul.f32 %v4490_v22, %v1253_v58 }
 0x58a   : > { %1390 = vmatprep.subr.bf16.mxu0 %v3891_v0  ;;  %v1255_v5 = vpop.permute.xlu0 %1254 }
 0x58b   : > { %v1270_v24 = vpack.c.bf16 %v1259_v1, %v1258_v4  ;;  %v1260_v26 = vmul.f32 %v4490_v22, %v1255_v5 }
 0x58c   : > { %v1257_v2 = vpop.permute.xlu1 %1256 }
 0x58d   : > { %1391 = vmatpush1.bf16.msra.mxu0 %v1268_v59  ;;  %v1261_v25 = vmul.f32 %v4490_v22, %v1257_v2 }
 0x58e   : > { %1392 = vmatprep.subr.bf16.mxu0 %v3891_v0 }
 0x58f   : > { %v1271_v8 = vpack.c.bf16 %v1261_v25, %v1260_v26 }
 0x591   : > { %1393 = vmatpush1.bf16.msra.mxu0 %v1269_v63 }
 0x592   : > { %1394 = vmatprep.subr.bf16.mxu0 %v3891_v0 }
 0x595   : > { %1395 = vmatpush1.bf16.msra.mxu0 %v1270_v24 }
 0x596   : > { %1396 = vmatprep.subr.bf16.mxu0 %v3891_v0 }
 0x599   : > { %1397 = vmatpush1.bf16.msra.mxu0 %v1271_v8 }
 0x59b   : > { %v1313_v32 = vpop.permute.xlu0 %1312 }
 0x59c   : > { %1411 = vmatmul.mubr.bf16.vlgmr.msra.gmra.mrb[12].mxu0 %v3262_v10 }
 0x59d   : > { %2877 = vmatprep.mubr.msk.bf16.mxu0 %vm937_vm2, %v3265_v11  ;;  %v1318_v36 = vpop.permute.xlu1 %1317 }
 0x59f   : > { %v1323_v42 = vpop.permute.xlu0 %1322 }
 0x5a1   : > { %v1328_v45 = vpop.permute.xlu1 %1327 }
 0x5a3   : > { %v1293_v53 = vpop.permute.xlu0 %1292 }
 0x5a4   : > { %1419 = vmatmul.mubr.bf16.gmra.mrb[16].mxu0 %v3267_v12 }
 0x5a5   : > { %2878 = vmatprep.mubr.msk.bf16.mxu0 %vm937_vm2, %v3268_v14  ;;  %v1298_v57 = vpop.permute.xlu1 %1297 }
 0x5a7   : > { %v1303_v63 = vpop.permute.xlu0 %1302 }
 0x5a9   : > { %v1308_v2 = vpop.permute.xlu1 %1307 }
 0x5ac   : > { %1427 = vmatmul.mubr.bf16.gmra.mrb[20].mxu0 %v3270_v15 }
 0x5ad   : > { %2879 = vmatprep.mubr.msk.bf16.mxu0 %vm937_vm2, %v3271_v16 }
 0x5b4   : > { %1435 = vmatmul.mubr.bf16.gmra.mrb[24].mxu0 %v3273_v17 }
 0x5b5   : > { %2999 = vmatprep.mubr.msk.bf16.mxu0 %vm937_vm2, %v3274_v18 }
 0x66f   : > { %v1412_v19 = vpop.f32.mrb[12].mxu0 }
 0x670   : > { %v1414_v20 = vpop.f32.mrb[13].mxu0  ;;  %v1413_v54 = vadd.f32 %v1412_v19, %v1293_v53  ;;  %v1713_v53 = vld [vmem:[#allocation11 + $0x88] sm:$0xff] }
 0x671   : > { %v1415_v23 = vpop.f32.mrb[14].mxu0 }
 0x672   : > { %v1417_v27 = vpop.f32.mrb[15].mxu0  ;;  %v1416_v59 = vadd.f32 %v1415_v23, %v1298_v57  ;;  %v1917_v57 = vld [vmem:[#allocation14 + $0x80] sm:$0xff] }
 0x677   : > { %v1420_v28 = vpop.f32.mrb[16].mxu0 }
 0x678   : > { %v1422_v29 = vpop.f32.mrb[17].mxu0  ;;  %v1421_v1 = vadd.f32 %v1420_v28, %v1303_v63 }
 0x679   : > { %v1423_v30 = vpop.f32.mrb[18].mxu0  ;;  %v3275_v29 = vld [vmem:[#allocation13 + $0x28] sm:$0xff]  }
 0x67a   : > { %v1425_v31 = vpop.f32.mrb[19].mxu0  ;;  %v1424_v5 = vadd.f32 %v1423_v30, %v1308_v2  ;;  %v1498_v30 = vpop.permute.xlu0 %1497 }
 0x67b   : > { %v1503_v31 = vpop.permute.xlu1 %1502 }
 0x67f   : > { %v1428_v33 = vpop.f32.mrb[20].mxu0 }
 0x680   : > { %v1429_v34 = vadd.f32 %v1428_v33, %v1313_v32  ;;  %v1430_v35 = vpop.f32.mrb[21].mxu0  ;;  %v1508_v33 = vpop.permute.xlu0 %1507 }
 0x681   : > { %v1431_v37 = vpop.f32.mrb[22].mxu0 }
 0x682   : > { %v2880_v38 = vmul.f32 -1.442695, %v1429_v34  ;;  %v1432_v39 = vadd.f32 %v1431_v37, %v1318_v36  ;;  %v1433_v40 = vpop.f32.mrb[23].mxu0 }
 0x684   : > { %3332 = vpow2.f32 %v2880_v38  ;;  %v2881_v41 = vmul.f32 -1.442695, %v1432_v39  ;;  %v1513_v38 = vpop.permute.xlu1 %1512 }
 0x686   : > { %3334 = vpow2.f32 %v2881_v41 }
 0x687   : > { %v1436_v46 = vpop.f32.mrb[24].mxu0 }
 0x688   : > { %v1437_v47 = vadd.f32 %v1436_v46, %v1323_v42  ;;  %v1438_v48 = vpop.f32.mrb[25].mxu0 }
 0x689   : > { %v1439_v49 = vpop.f32.mrb[26].mxu0 }
 0x68a   : > { %v2882_v50 = vmul.f32 -1.442695, %v1437_v47  ;;  %v1440_v51 = vadd.f32 %v1439_v49, %v1328_v45  ;;  %v1441_v52 = vpop.f32.mrb[27].mxu0 }
 0x68b   : > { %v1712_v52 = vld [vmem:[#allocation11 + $0x80] sm:$0xff] }
 0x68c   : > { %3336 = vpow2.f32 %v2882_v50  ;;  %v2883_v56 = vmul.f32 -1.442695, %v1440_v51  ;;  %v1719_v51 = vld [vmem:[#allocation11 + $0xb8] sm:$0xff] }
 0x68e   : > { %v3333_v58 = vpop.eup %3332  ;;  %3338 = vpow2.f32 %v2883_v56  ;;  %v1715_v56 = vld [vmem:[#allocation11 + $0x98] sm:$0xff] }
 0x68f   : > { %v1459_v60 = vadd.f32 1.0, %v3333_v58  ;;  %3340 = vtanh.f32 %v1413_v54  ;;  %v1714_v54 = vld [vmem:[#allocation11 + $0x90] sm:$0xff]  ;;  %v1918_v58 = vld [vmem:[#allocation14 + $0x88] sm:$0xff] }
 0x690   : > { %v3335_v61 = vpop.eup %3334 }
 0x691   : > { %3342 = vrcp.f32 %v1459_v60  ;;  %v1460_v62 = vadd.f32 1.0, %v3335_v61  ;;  %v1920_v60 = vld [vmem:[#allocation14 + $0x98] sm:$0xff] }
 0x692   : > { %3344 = vtanh.f32 %v1416_v59  ;;  %v1919_v59 = vld [vmem:[#allocation14 + $0x90] sm:$0xff] }
 0x693   : > { %3346 = vrcp.f32 %v1460_v62 }
 0x694   : > { %3348 = vtanh.f32 %v1421_v1 }
 0x696   : > { %v3337_v4 = vpop.eup %3336 }
 0x697   : > { %v1461_v24 = vadd.f32 1.0, %v3337_v4 }
 0x698   : > { %v3339_v25 = vpop.eup %3338 }
 0x699   : > { %3350 = vrcp.f32 %v1461_v24  ;;  %v1462_v26 = vadd.f32 1.0, %v3339_v25  ;;  %v3341_v8 = vpop.eup %3340 }
 0x69a   : > { %3352 = vtanh.f32 %v1424_v5 }
 0x69b   : > { %v3343_v10 = vpop.eup %3342  ;;  %3354 = vrcp.f32 %v1462_v26 }
 0x69c   : > { %v3345_v11 = vpop.eup %3344  ;;  %v1471_v12 = vmul.f32 %v3343_v10, %v3341_v8 }
 0x69d   : > { %v3347_v14 = vpop.eup %3346 }
 0x69e   : > { %v1472_v15 = vmul.f32 %v3347_v14, %v3345_v11  ;;  %v3349_v17 = vpop.eup %3348 }
 0x6a0   : > { %v1475_v16 = vpack.c.bf16 %v1472_v15, %v1471_v12 }
 0x6a2   : > { %2995 = vmatprep.subr.bf16.mxu0 %v1475_v16 }
 0x6a3   : > { %v3351_v18 = vpop.eup %3350  ;;  %2996 = vmatpush3.bf16.msra.mxu0 %v1475_v16 }
 0x6a4   : > { %v3353_v19 = vpop.eup %3352  ;;  %v1473_v20 = vmul.f32 %v3351_v18, %v3349_v17 }
 0x6a5   : > { %v3355_v23 = vpop.eup %3354 }
 0x6a6   : > { %v1474_v27 = vmul.f32 %v3355_v23, %v3353_v19 }
 0x6a8   : > { %v1476_v28 = vpack.c.bf16 %v1474_v27, %v1473_v20 }
 0x6aa   : > { %2997 = vmatprep.subr.bf16.mxu0 %v1476_v28 }
 0x6ab   : > { %2998 = vmatpush3.bf16.msra.mxu0 %v1476_v28 }
 0x6ae   : > { %3000 = vmatmul.mubr.msk.bf16.vlgmr.msra.gmra.mrb[28].mxu0 %vm937_vm2, %v3275_v29 }
 0x781   : > { %v3001_v32 = vpop.f32.mrb[28].mxu0 }
 0x782   : > { %v1601_v34 = vpop.f32.mrb[29].mxu0  ;;  %v1610_v35 = vadd.f32 %v3001_v32, %v1508_v33 }
 0x783   : > { %v1602_v36 = vadd.f32 %v1601_v34, %v1498_v30  ;;  %v3002_v37 = vpop.f32.mrb[30].mxu0 }
 0x784   : > { %v1604_v39 = vpop.f32.mrb[31].mxu0  ;;  %v1613_v41 = vadd.f32 %v3002_v37, %v1513_v38  ;;  %v1634_v45 = vadd.f32 %v1610_v35, %v4519_v7  ;;  %v1717_v7 = vld [vmem:[#allocation11 + $0xa8] sm:$0xff] }
 0x785   : > { %v1632_v40 = vadd.f32 %v1602_v36, %v4509_v3  ;;  %v1605_v42 = vadd.f32 %v1604_v39, %v1503_v31 }
 0x786   : > { %v1635_v48 = vadd.f32 %v1613_v41, %v4524_v21  ;;  %v4604_v50 = vmul.f32 %v4411_v13, %v1634_v45  ;;  %v1718_v21 = vld [vmem:[#allocation11 + $0xb0] sm:$0xff] }
 0x787   : > { %v4594_v46 = vmul.f32 %v4411_v13, %v1632_v40  ;;  %v1633_v47 = vadd.f32 %v1605_v42, %v4514_v6  ;;  %v3278_v6 = vld [vmem:[#allocation10 + $0x84] ss:$8 sps:$4 sm:$0xff]  }
 0x788   : > { %v4609_v3 = vmul.f32 %v4411_v13, %v1635_v48  ;;  %2900 = vmatprep.mubr.msk.bf16.mxu1 %vm937_vm2, %v3278_v6  ;;  %v3276_v6 = vld [vmem:[#allocation10 + $0x80] ss:$8 sps:$4 sm:$0xff]  }
 0x789   : > { %v4599_v49 = vmul.f32 %v4411_v13, %v1633_v47  ;;  %1644 = vrot.lane.b32.xlu0 %v4594_v46, %s3892_s20  ;;  %v1716_v13 = vld [vmem:[#allocation11 + $0xa0] sm:$0xff] }
 0x78a   : > { %v1697_v31 = vpack.c.bf16 %v4609_v3, %v4604_v50 }
 0x78b   : > { %1646 = vrot.lane.b32.xlu1 %v4599_v49, %s3892_s20  ;;  %v1696_v27 = vpack.c.bf16 %v4599_v49, %v4594_v46 }
 0x78d   : > { %1648 = vrot.lane.b32.xlu0 %v4604_v50, %s3892_s20 }
 0x78f   : > { %1650 = vrot.lane.b32.xlu1 %v4609_v3, %s3892_s20 }
 0x791   : > { %1656 = vrot.lane.b32.xlu0 %v4594_v46, %s3893_s21 }
 0x793   : > { %1658 = vrot.lane.b32.xlu1 %v4599_v49, %s3893_s21 }
 0x795   : > { %1660 = vrot.lane.b32.xlu0 %v4604_v50, %s3893_s21 }
 0x797   : > { %1662 = vrot.lane.b32.xlu1 %v4609_v3, %s3893_s21 }
 0x799   : > { %1668 = vrot.lane.b32.xlu0 %v4594_v46, %s3894_s19 }
 0x79b   : > { %1670 = vrot.lane.b32.xlu1 %v4599_v49, %s3894_s19 }
 0x79d   : > { %1672 = vrot.lane.b32.xlu0 %v4604_v50, %s3894_s19 }
 0x79f   : > { %1674 = vrot.lane.b32.xlu1 %v4609_v3, %s3894_s19 }
 0x7a1   : > { %1680 = vrot.lane.b32.xlu0 %v4594_v46, %s3895_s15 }
 0x7a3   : > { %1682 = vrot.lane.b32.xlu1 %v4599_v49, %s3895_s15 }
 0x7a5   : > { %1684 = vrot.lane.b32.xlu0 %v4604_v50, %s3895_s15 }
 0x7a7   : > { %1686 = vrot.lane.b32.xlu1 %v4609_v3, %s3895_s15 }
 0x7a9   : > { %1742 = vperm.xlu0 %3242, %v1716_v13  }
 0x7ab   : > { %1747 = vperm.xlu1 %3243, %v1717_v7   ;;  %v3279_v7 = vld [vmem:[#allocation10 + $0x94] ss:$8 sps:$4 sm:$0xff]  }
 0x7ad   : > { %1752 = vperm.xlu0 %3242, %v1718_v21   ;;  %v3281_v21 = vld [vmem:[#allocation10 + $0x90] ss:$8 sps:$4 sm:$0xff]  }
 0x7af   : > { %1757 = vperm.xlu1 %3243, %v1719_v51   ;;  %v3282_v51 = vld [vmem:[#allocation10 + $0xa4] ss:$8 sps:$4 sm:$0xff]  }
 0x7b1   : > { %1722 = vperm.xlu0 %3242, %v1712_v52   ;;  %v3284_v52 = vld [vmem:[#allocation10 + $0xa0] ss:$8 sps:$4 sm:$0xff]  }
 0x7b3   : > { %1727 = vperm.xlu1 %3243, %v1713_v53   ;;  %v3285_v53 = vld [vmem:[#allocation10 + $0xb4] ss:$8 sps:$4 sm:$0xff]  }
 0x7b5   : > { %1732 = vperm.xlu0 %3242, %v1714_v54   ;;  %v3287_v54 = vld [vmem:[#allocation10 + $0xb0] ss:$8 sps:$4 sm:$0xff]  }
 0x7b7   : > { %1737 = vperm.xlu1 %3243, %v1715_v56   ;;  %v3288_v56 = vld [vmem:[#allocation13 + $0x30] sm:$0xff]  }
 0x7b8   : > { %3003 = vmatprep.mubr.msk.bf16.mxu0 %vm937_vm2, %v3288_v56 }
 0x7b9   : > { %1927 = vperm.xlu0 %3242, %v1917_v57   ;;  %v3289_v57 = vld [vmem:[#allocation13 + $0x38] sm:$0xff]  }
 0x7ba   : > { %3004 = vmatmul.mubr.msk.bf16.gmra.mrb[8].mxu0 %vm937_vm2, %v3289_v57 }
 0x7bb   : > { %1932 = vperm.xlu1 %3243, %v1918_v58   ;;  %v3290_v58 = vld [vmem:[#allocation13 + $0x40] sm:$0xff]  }
 0x7bc   : > { %3011 = vmatprep.mubr.msk.bf16.mxu0 %vm937_vm2, %v3290_v58 }
 0x7bd   : > { %1937 = vperm.xlu0 %3242, %v1919_v59  }
 0x7bf   : > { %1942 = vperm.xlu1 %3243, %v1920_v60  }
 0x7fb   : > { %v1645_v61 = vpop.permute.xlu0 %1644 }
 0x7fc   : > { %v1652_v63 = vmul.f32 %v4459_v44, %v1645_v61 }
 0x7fd   : > { %v1647_v62 = vpop.permute.xlu1 %1646 }
 0x7fe   : > { %v1653_v1 = vmul.f32 %v4459_v44, %v1647_v62 }
 0x7ff   : > { %v1649_v2 = vpop.permute.xlu0 %1648 }
 0x800   : > { %v1692_v4 = vpack.c.bf16 %v1653_v1, %v1652_v63  ;;  %v1654_v24 = vmul.f32 %v4459_v44, %v1649_v2 }
 0x801   : > { %v1651_v5 = vpop.permute.xlu1 %1650 }
 0x802   : > { %v1655_v25 = vmul.f32 %v4459_v44, %v1651_v5  ;;  %1809 = vmatpush1.bf16.msra.mxu1 %v1692_v4 }
 0x803   : > { %v1657_v26 = vpop.permute.xlu0 %1656  ;;  %1810 = vmatprep.subr.bf16.mxu1 %v3891_v0 }
 0x804   : > { %v1693_v8 = vpack.c.bf16 %v1655_v25, %v1654_v24  ;;  %v1664_v11 = vmul.f32 %v4466_v55, %v1657_v26 }
 0x805   : > { %v1659_v10 = vpop.permute.xlu1 %1658 }
 0x806   : > { %v1665_v12 = vmul.f32 %v4466_v55, %v1659_v10  ;;  %1811 = vmatpush1.bf16.msra.mxu1 %v1693_v8 }
 0x807   : > { %v1661_v14 = vpop.permute.xlu0 %1660  ;;  %1812 = vmatprep.subr.bf16.mxu1 %v3891_v0 }
 0x808   : > { %v1694_v15 = vpack.c.bf16 %v1665_v12, %v1664_v11  ;;  %v1666_v17 = vmul.f32 %v4466_v55, %v1661_v14 }
 0x809   : > { %v1663_v16 = vpop.permute.xlu1 %1662 }
 0x80a   : > { %v1667_v18 = vmul.f32 %v4466_v55, %v1663_v16  ;;  %1813 = vmatpush1.bf16.msra.mxu1 %v1694_v15 }
 0x80b   : > { %1814 = vmatprep.subr.bf16.mxu1 %v3891_v0  ;;  %v1669_v20 = vpop.permute.xlu0 %1668 }
 0x80c   : > { %v1695_v19 = vpack.c.bf16 %v1667_v18, %v1666_v17  ;;  %v1676_v32 = vmul.f32 %v4479_v9, %v1669_v20 }
 0x80d   : > { %v1671_v23 = vpop.permute.xlu1 %1670 }
 0x80e   : > { %1815 = vmatpush1.bf16.msra.mxu1 %v1695_v19  ;;  %v1677_v30 = vmul.f32 %v4479_v9, %v1671_v23 }
 0x80f   : > { %1816 = vmatprep.subr.bf16.mxu1 %v3891_v0  ;;  %v1673_v29 = vpop.permute.xlu0 %1672 }
 0x810   : > { %v1698_v34 = vpack.c.bf16 %v1677_v30, %v1676_v32  ;;  %v1678_v37 = vmul.f32 %v4479_v9, %v1673_v29 }
 0x811   : > { %v1675_v28 = vpop.permute.xlu1 %1674 }
 0x812   : > { %1817 = vmatpush1.bf16.msra.mxu1 %v1696_v27  ;;  %v1679_v35 = vmul.f32 %v4479_v9, %v1675_v28 }
 0x813   : > { %1818 = vmatprep.subr.bf16.mxu1 %v3891_v0  ;;  %v1681_v36 = vpop.permute.xlu0 %1680 }
 0x814   : > { %v1699_v38 = vpack.c.bf16 %v1679_v35, %v1678_v37  ;;  %v1688_v41 = vmul.f32 %v4490_v22, %v1681_v36 }
 0x815   : > { %v1683_v33 = vpop.permute.xlu1 %1682 }
 0x816   : > { %1819 = vmatpush1.bf16.msra.mxu1 %v1697_v31  ;;  %v1689_v39 = vmul.f32 %v4490_v22, %v1683_v33 }
 0x817   : > { %1820 = vmatprep.subr.bf16.mxu1 %v3891_v0  ;;  %v1685_v42 = vpop.permute.xlu0 %1684 }
 0x818   : > { %v1700_v45 = vpack.c.bf16 %v1689_v39, %v1688_v41  ;;  %v1690_v48 = vmul.f32 %v4490_v22, %v1685_v42 }
 0x819   : > { %v1687_v40 = vpop.permute.xlu1 %1686 }
 0x81a   : > { %1821 = vmatpush1.bf16.msra.mxu1 %v1698_v34  ;;  %v1691_v47 = vmul.f32 %v4490_v22, %v1687_v40 }
 0x81b   : > { %1822 = vmatprep.subr.bf16.mxu1 %v3891_v0 }
 0x81c   : > { %v1701_v13 = vpack.c.bf16 %v1691_v47, %v1690_v48 }
 0x81e   : > { %1823 = vmatpush1.bf16.msra.mxu1 %v1699_v38 }
 0x81f   : > { %1824 = vmatprep.subr.bf16.mxu1 %v3891_v0 }
 0x822   : > { %1825 = vmatpush1.bf16.msra.mxu1 %v1700_v45 }
 0x823   : > { %1826 = vmatprep.subr.bf16.mxu1 %v3891_v0 }
 0x826   : > { %1827 = vmatpush1.bf16.msra.mxu1 %v1701_v13 }
 0x827   : > { %2238 = vmatprep.subr.bf16.mxu1 %v3891_v0 }
 0x828   : > { %v1743_v5 = vpop.permute.xlu0 %1742 }
 0x829   : > { %1841 = vmatmul.mubr.bf16.vlgmr.msra.gmra.mrb[16].mxu1 %v3276_v6 }
 0x82a   : > { %2901 = vmatprep.mubr.msk.bf16.mxu1 %vm937_vm2, %v3279_v7  ;;  %v1748_v8 = vpop.permute.xlu1 %1747 }
 0x82c   : > { %v1753_v16 = vpop.permute.xlu0 %1752 }
 0x82e   : > { %v1758_v17 = vpop.permute.xlu1 %1757 }
 0x830   : > { %v1723_v30 = vpop.permute.xlu0 %1722 }
 0x831   : > { %1849 = vmatmul.mubr.bf16.gmra.mrb[20].mxu1 %v3281_v21 }
 0x832   : > { %2902 = vmatprep.mubr.msk.bf16.mxu1 %vm937_vm2, %v3282_v51  ;;  %v1728_v33 = vpop.permute.xlu1 %1727 }
 0x834   : > { %v1733_v39 = vpop.permute.xlu0 %1732 }
 0x836   : > { %v1738_v41 = vpop.permute.xlu1 %1737 }
 0x839   : > { %1857 = vmatmul.mubr.bf16.gmra.mrb[24].mxu1 %v3284_v52 }
 0x83a   : > { %2903 = vmatprep.mubr.msk.bf16.mxu1 %vm937_vm2, %v3285_v53 }
 0x841   : > { %1865 = vmatmul.mubr.bf16.gmra.mrb[28].mxu1 %v3287_v54 }
 0x8fc   : > { %v1842_v59 = vpop.f32.mrb[16].mxu1 }
 0x8fd   : > { %v1844_v60 = vpop.f32.mrb[17].mxu1  ;;  %v1843_v31 = vadd.f32 %v1842_v59, %v1723_v30  ;;  %v2148_v30 = vld [vmem:[#allocation11 + $0xf0] sm:$0xff] }
 0x8fe   : > { %v1845_v61 = vpop.f32.mrb[18].mxu1 }
 0x8ff   : > { %v1847_v62 = vpop.f32.mrb[19].mxu1  ;;  %v1846_v35 = vadd.f32 %v1845_v61, %v1728_v33  ;;  %v2143_v33 = vld [vmem:[#allocation11 + $0xc8] sm:$0xff] }
 0x904   : > { %v1850_v63 = vpop.f32.mrb[20].mxu1 }
 0x905   : > { %v1852_v1 = vpop.f32.mrb[21].mxu1  ;;  %v1851_v40 = vadd.f32 %v1850_v63, %v1733_v39  ;;  %v3291_v63 = vld [vmem:[#allocation13 + $0x48] sm:$0xff]  }
 0x906   : > { %v1853_v2 = vpop.f32.mrb[22].mxu1  ;;  %v1928_v1 = vpop.permute.xlu0 %1927  ;;  %v1492_v39 = vld [vmem:[#allocation14 + $0x68] sm:$0xff] }
 0x907   : > { %v1855_v4 = vpop.f32.mrb[23].mxu1  ;;  %v1854_v45 = vadd.f32 %v1853_v2, %v1738_v41  ;;  %v1933_v2 = vpop.permute.xlu1 %1932  ;;  %v1922_v41 = vld [vmem:[#allocation14 + $0xa8] sm:$0xff] }
 0x90a   : > { %v1938_v4 = vpop.permute.xlu0 %1937 }
 0x90c   : > { %v1858_v24 = vpop.f32.mrb[24].mxu1 }
 0x90d   : > { %v1859_v25 = vadd.f32 %v1858_v24, %v1743_v5  ;;  %v1860_v26 = vpop.f32.mrb[25].mxu1 }
 0x90e   : > { %v1861_v10 = vpop.f32.mrb[26].mxu1  ;;  %v1943_v26 = vpop.permute.xlu1 %1942 }
 0x90f   : > { %v2904_v11 = vmul.f32 -1.442695, %v1859_v25  ;;  %v1862_v12 = vadd.f32 %v1861_v10, %v1748_v8  ;;  %v1863_v14 = vpop.f32.mrb[27].mxu1 }
 0x911   : > { %3356 = vpow2.f32 %v2904_v11  ;;  %v2905_v15 = vmul.f32 -1.442695, %v1862_v12 }
 0x913   : > { %3358 = vpow2.f32 %v2905_v15 }
 0x914   : > { %v1866_v18 = vpop.f32.mrb[28].mxu1 }
 0x915   : > { %v1867_v19 = vadd.f32 %v1866_v18, %v1753_v16  ;;  %v1868_v20 = vpop.f32.mrb[29].mxu1  ;;  %v4682_v18 = vld [vmem:[%s557_s4] ss:$0 sm:$0xff]  ;;  %s2564_s4 = scalar_lea.sflag [#allocation24], %s4360_s18 }
 0x916   : > { %v1869_v23 = vpop.f32.mrb[30].mxu1 }
 0x917   : > { %v2906_v27 = vmul.f32 -1.442695, %v1867_v19  ;;  %v1870_v28 = vadd.f32 %v1869_v23, %v1758_v17  ;;  %v1871_v29 = vpop.f32.mrb[31].mxu1 }
 0x918   : > { %v2147_v29 = vld [vmem:[#allocation11 + $0xe8] sm:$0xff] }
 0x919   : > { %3360 = vpow2.f32 %v2906_v27  ;;  %v2907_v32 = vmul.f32 -1.442695, %v1870_v28  ;;  %v3294_v28 = vld [vmem:[#allocation10 + $0xc4] ss:$8 sps:$4 sm:$0xff]  }
 0x91a   : > { %2924 = vmatprep.mubr.msk.bf16.mxu1 %vm937_vm2, %v3294_v28 }
 0x91b   : > { %v3357_v34 = vpop.eup %3356  ;;  %3362 = vpow2.f32 %v2907_v32  ;;  %v2142_v32 = vld [vmem:[#allocation11 + $0xc0] sm:$0xff] }
 0x91c   : > { %v1889_v36 = vadd.f32 1.0, %v3357_v34  ;;  %3364 = vtanh.f32 %v1843_v31  ;;  %v2149_v31 = vld [vmem:[#allocation11 + $0xf8] sm:$0xff]  ;;  %v2144_v34 = vld [vmem:[#allocation11 + $0xd0] sm:$0xff] }
 0x91d   : > { %v3359_v37 = vpop.eup %3358 }
 0x91e   : > { %3366 = vrcp.f32 %v1889_v36  ;;  %v1890_v38 = vadd.f32 1.0, %v3359_v37  ;;  %v1061_v36 = vld [vmem:[#allocation14 + $0x20] sm:$0xff]  ;;  %v1062_v37 = vld [vmem:[#allocation14 + $0x28] sm:$0xff] }
 0x91f   : > { %3368 = vtanh.f32 %v1846_v35  ;;  %v2145_v35 = vld [vmem:[#allocation11 + $0xd8] sm:$0xff] }
 0x920   : > { %3370 = vrcp.f32 %v1890_v38  ;;  %v1491_v38 = vld [vmem:[#allocation14 + $0x60] sm:$0xff] }
 0x921   : > { %3372 = vtanh.f32 %v1851_v40  ;;  %v1921_v40 = vld [vmem:[#allocation14 + $0xa0] sm:$0xff] }
 0x923   : > { %v3361_v42 = vpop.eup %3360 }
 0x924   : > { %v1891_v47 = vadd.f32 1.0, %v3361_v42  ;;  %v1063_v42 = vld [vmem:[#allocation14 + $0x30] sm:$0xff] }
 0x925   : > { %v3363_v48 = vpop.eup %3362 }
 0x926   : > { %3374 = vrcp.f32 %v1891_v47  ;;  %v1892_v13 = vadd.f32 1.0, %v3363_v48  ;;  %v3365_v6 = vpop.eup %3364  ;;  %v1493_v47 = vld [vmem:[#allocation14 + $0x70] sm:$0xff]  ;;  %v1494_v48 = vld [vmem:[#allocation14 + $0x78] sm:$0xff] }
 0x927   : > { %3376 = vtanh.f32 %v1854_v45  ;;  %v1064_v45 = vld [vmem:[#allocation14 + $0x38] sm:$0xff] }
 0x928   : > { %v3367_v7 = vpop.eup %3366  ;;  %3378 = vrcp.f32 %v1892_v13  ;;  %v2341_v13 = vld [vmem:[#allocation17] sm:$0xff] }
 0x929   : > { %v3369_v21 = vpop.eup %3368  ;;  %v1901_v51 = vmul.f32 %v3367_v7, %v3365_v6  ;;  %v2342_v6 = vld [vmem:[#allocation17 + $0x8] sm:$0xff]  ;;  %v1923_v7 = vld [vmem:[#allocation14 + $0xb0] sm:$0xff] }
 0x92a   : > { %v3371_v52 = vpop.eup %3370 }
 0x92b   : > { %v1902_v53 = vmul.f32 %v3371_v52, %v3369_v21  ;;  %v3373_v56 = vpop.eup %3372  ;;  %v1924_v21 = vld [vmem:[#allocation14 + $0xb8] sm:$0xff]  ;;  %v2344_v52 = vld [vmem:[#allocation17 + $0x18] sm:$0xff] }
 0x92d   : > { %v1905_v54 = vpack.c.bf16 %v1902_v53, %v1901_v51  ;;  %v2343_v51 = vld [vmem:[#allocation17 + $0x10] sm:$0xff] }
 0x92e   : > { %v2494_v53 = vld [vmem:[#allocation20 + $0x8] sm:$0xff] }
 0x92f   : > { %3007 = vmatprep.subr.bf16.mxu0 %v1905_v54 }
 0x930   : > { %v3375_v57 = vpop.eup %3374  ;;  %3008 = vmatpush3.bf16.msra.mxu0 %v1905_v54  ;;  %v2441_v54 = vld [vmem:[#allocation20] sm:$0xff] }
 0x931   : > { %v3377_v58 = vpop.eup %3376  ;;  %v1903_v59 = vmul.f32 %v3375_v57, %v3373_v56 }
 0x932   : > { %v3379_v60 = vpop.eup %3378 }
 0x933   : > { %v1904_v61 = vmul.f32 %v3379_v60, %v3377_v58 }
 0x935   : > { %v1906_v62 = vpack.c.bf16 %v1904_v61, %v1903_v59 }
 0x937   : > { %3009 = vmatprep.subr.bf16.mxu0 %v1906_v62 }
 0x938   : > { %3010 = vmatpush3.bf16.msra.mxu0 %v1906_v62 }
 0x93b   : > { %3012 = vmatmul.mubr.msk.bf16.vlgmr.msra.gmra.mrb[32].mxu0 %vm937_vm2, %v3291_v63 }
 0xa0e   : > { %v3013_v5 = vpop.f32.mrb[32].mxu0 }
 0xa0f   : > { %v2040_v24 = vadd.f32 %v3013_v5, %v1938_v4  ;;  %v2031_v25 = vpop.f32.mrb[33].mxu0 }
 0xa10   : > { %v2032_v8 = vadd.f32 %v2031_v25, %v1928_v1  ;;  %v3014_v10 = vpop.f32.mrb[34].mxu0 }
 0xa11   : > { %v2064_v11 = vadd.f32 %v2040_v24, %v4604_v50  ;;  %v2043_v12 = vadd.f32 %v3014_v10, %v1943_v26  ;;  %v2034_v14 = vpop.f32.mrb[35].mxu0 }
 0xa12   : > { %v2062_v15 = vadd.f32 %v2032_v8, %v4594_v46  ;;  %v2035_v16 = vadd.f32 %v2034_v14, %v1933_v2 }
 0xa13   : > { %v2065_v17 = vadd.f32 %v2043_v12, %v4609_v3  ;;  %v4689_v23 = vmul.f32 %v4682_v18, %v2064_v11  ;;  %v2146_v3 = vld [vmem:[#allocation11 + $0xe0] sm:$0xff] }
 0xa14   : > { %v4685_v19 = vmul.f32 %v4682_v18, %v2062_v15  ;;  %v2063_v20 = vadd.f32 %v2035_v16, %v4599_v49 }
 0xa15   : > { %v4692_v50 = vmul.f32 %v4682_v18, %v2065_v17 }
 0xa16   : > { %v4695_v27 = vmul.f32 %v4682_v18, %v2063_v20  ;;  %2074 = vrot.lane.b32.xlu0 %v4685_v19, %s3892_s20 }
 0xa17   : > { %v2127_v46 = vpack.c.bf16 %v4692_v50, %v4689_v23 }
 0xa18   : > { %2076 = vrot.lane.b32.xlu1 %v4695_v27, %s3892_s20  ;;  %v2126_v49 = vpack.c.bf16 %v4695_v27, %v4685_v19 }
 0xa1a   : > { %2078 = vrot.lane.b32.xlu0 %v4689_v23, %s3892_s20 }
 0xa1c   : > { %2080 = vrot.lane.b32.xlu1 %v4692_v50, %s3892_s20  ;;  %s3747_s20 = scalar_lea.vmem %s4795_s12, 16 }
 0xa1d   : > { %p3748_p3 = scmp.ne.s32.totalorder %s4795_s12, %s3747_s20 }
 0xa1e   : > { %2086 = vrot.lane.b32.xlu0 %v4685_v19, %s3893_s21 }
 0xa1f   : > { %p3749_p4 = pnand %p3748_p3, %p4959_p6 }
 0xa20   : > { %2088 = vrot.lane.b32.xlu1 %v4695_v27, %s3893_s21 }
 0xa21   : > { %p3750_p8 = pneg %p3749_p4 }
 0xa22   : > { %2090 = vrot.lane.b32.xlu0 %v4689_v23, %s3893_s21 }
 0xa24   : > { %2092 = vrot.lane.b32.xlu1 %v4692_v50, %s3893_s21 }
 0xa26   : > { %2098 = vrot.lane.b32.xlu0 %v4685_v19, %s3894_s19 }
 0xa28   : > { %2100 = vrot.lane.b32.xlu1 %v4695_v27, %s3894_s19 }
 0xa2a   : > { %2102 = vrot.lane.b32.xlu0 %v4689_v23, %s3894_s19 }
 0xa2c   : > { %2104 = vrot.lane.b32.xlu1 %v4692_v50, %s3894_s19 }
 0xa2e   : > { %2110 = vrot.lane.b32.xlu0 %v4685_v19, %s3895_s15 }
 0xa30   : > { %2112 = vrot.lane.b32.xlu1 %v4695_v27, %s3895_s15 }
 0xa32   : > { %2114 = vrot.lane.b32.xlu0 %v4689_v23, %s3895_s15 }
 0xa34   : > { %2116 = vrot.lane.b32.xlu1 %v4692_v50, %s3895_s15 }
 0xa36   : > { %2172 = vperm.xlu0 %3242, %v2146_v3  }
 0xa38   : > { %2177 = vperm.xlu1 %3243, %v2147_v29  }
 0xa3a   : > { %2182 = vperm.xlu0 %3242, %v2148_v30  }
 0xa3c   : > { %2187 = vperm.xlu1 %3243, %v2149_v31  }
 0xa3e   : > { %2152 = vperm.xlu0 %3242, %v2142_v32  }
 0xa40   : > { %2157 = vperm.xlu1 %3243, %v2143_v33  }
 0xa42   : > { %2162 = vperm.xlu0 %3242, %v2144_v34   ;;  %v3292_v34 = vld [vmem:[#allocation10 + $0xc0] ss:$8 sps:$4 sm:$0xff]  }
 0xa44   : > { %2167 = vperm.xlu1 %3243, %v2145_v35   ;;  %v3295_v35 = vld [vmem:[#allocation10 + $0xd4] ss:$8 sps:$4 sm:$0xff]  }
 0xa46   : > { %1087 = vperm.xlu0 %3242, %v1061_v36   ;;  %v3297_v36 = vld [vmem:[#allocation10 + $0xd0] ss:$8 sps:$4 sm:$0xff]  }
 0xa48   : > { %1092 = vperm.xlu1 %3243, %v1062_v37   ;;  %v3298_v37 = vld [vmem:[#allocation10 + $0xe4] ss:$8 sps:$4 sm:$0xff]  }
 0xa4a   : > { %1517 = vperm.xlu0 %3242, %v1491_v38   ;;  %v3300_v38 = vld [vmem:[#allocation10 + $0xe0] ss:$8 sps:$4 sm:$0xff]  }
 0xa4c   : > { %1522 = vperm.xlu1 %3243, %v1492_v39   ;;  %v3301_v39 = vld [vmem:[#allocation10 + $0xf4] ss:$8 sps:$4 sm:$0xff]  }
 0xa4e   : > { %1947 = vperm.xlu0 %3242, %v1921_v40   ;;  %v3305_v40 = vld [vmem:[#allocation13 + $0x58] sm:$0xff]  }
 0xa50   : > { %1952 = vperm.xlu1 %3243, %v1922_v41   ;;  %v3306_v41 = vld [vmem:[#allocation16] sm:$0xff]  }
 0xa52   : > { %1097 = vperm.xlu0 %3242, %v1063_v42  }
 0xa54   : > { %1102 = vperm.xlu1 %3243, %v1064_v45  }
 0xa56   : > { %1527 = vperm.xlu0 %3242, %v1493_v47  }
 0xa58   : > { %1532 = vperm.xlu1 %3243, %v1494_v48  }
 0xa5a   : > { %2347 = vperm.xlu0 %3242, %v2341_v13  }
 0xa5c   : > { %2352 = vperm.xlu1 %3243, %v2342_v6  }
 0xa5e   : > { %1957 = vperm.xlu0 %3242, %v1923_v7  }
 0xa60   : > { %1962 = vperm.xlu1 %3243, %v1924_v21  }
 0xa62   : > { %2357 = vperm.xlu0 %3242, %v2343_v51  }
 0xa64   : > { %2362 = vperm.xlu1 %3243, %v2344_v52  }
 0xa66   : > { %2497 = vperm.xlu0 %3242, %v2494_v53  }
 0xa68   : > { %2444 = vperm.xlu1 %3243, %v2441_v54  }
 0xa88   : > { %v2075_v56 = vpop.permute.xlu0 %2074 }
 0xa89   : > { %v2082_v58 = vmul.f32 %v4459_v44, %v2075_v56 }
 0xa8a   : > { %v2077_v57 = vpop.permute.xlu1 %2076 }
 0xa8b   : > { %v2083_v59 = vmul.f32 %v4459_v44, %v2077_v57 }
 0xa8c   : > { %v2079_v60 = vpop.permute.xlu0 %2078 }
 0xa8d   : > { %v2122_v61 = vpack.c.bf16 %v2083_v59, %v2082_v58  ;;  %v2084_v63 = vmul.f32 %v4459_v44, %v2079_v60 }
 0xa8e   : > { %v2081_v62 = vpop.permute.xlu1 %2080 }
 0xa8f   : > { %v2085_v1 = vmul.f32 %v4459_v44, %v2081_v62  ;;  %2239 = vmatpush1.bf16.msra.mxu1 %v2122_v61 }
 0xa90   : > { %v2087_v2 = vpop.permute.xlu0 %2086  ;;  %2240 = vmatprep.subr.bf16.mxu1 %v3891_v0 }
 0xa91   : > { %v2123_v4 = vpack.c.bf16 %v2085_v1, %v2084_v63  ;;  %v2094_v24 = vmul.f32 %v4466_v55, %v2087_v2 }
 0xa92   : > { %v2089_v5 = vpop.permute.xlu1 %2088 }
 0xa93   : > { %v2095_v25 = vmul.f32 %v4466_v55, %v2089_v5  ;;  %2241 = vmatpush1.bf16.msra.mxu1 %v2123_v4 }
 0xa94   : > { %v2091_v26 = vpop.permute.xlu0 %2090  ;;  %2242 = vmatprep.subr.bf16.mxu1 %v3891_v0 }
 0xa95   : > { %v2124_v8 = vpack.c.bf16 %v2095_v25, %v2094_v24  ;;  %v2096_v11 = vmul.f32 %v4466_v55, %v2091_v26 }
 0xa96   : > { %v2093_v10 = vpop.permute.xlu1 %2092 }
 0xa97   : > { %v2097_v44 = vmul.f32 %v4466_v55, %v2093_v10  ;;  %2243 = vmatpush1.bf16.msra.mxu1 %v2124_v8 }
 0xa98   : > { %2244 = vmatprep.subr.bf16.mxu1 %v3891_v0  ;;  %v2099_v14 = vpop.permute.xlu0 %2098 }
 0xa99   : > { %v2125_v12 = vpack.c.bf16 %v2097_v44, %v2096_v11  ;;  %v2106_v55 = vmul.f32 %v4479_v9, %v2099_v14 }
 0xa9a   : > { %v2101_v15 = vpop.permute.xlu1 %2100 }
 0xa9b   : > { %2245 = vmatpush1.bf16.msra.mxu1 %v2125_v12  ;;  %v2107_v20 = vmul.f32 %v4479_v9, %v2101_v15 }
 0xa9c   : > { %2246 = vmatprep.subr.bf16.mxu1 %v3891_v0  ;;  %v2103_v17 = vpop.permute.xlu0 %2102 }
 0xa9d   : > { %v2128_v28 = vpack.c.bf16 %v2107_v20, %v2106_v55  ;;  %v2108_v19 = vmul.f32 %v4479_v9, %v2103_v17 }
 0xa9e   : > { %v2105_v16 = vpop.permute.xlu1 %2104 }
 0xa9f   : > { %2247 = vmatpush1.bf16.msra.mxu1 %v2126_v49  ;;  %v2109_v29 = vmul.f32 %v4479_v9, %v2105_v16 }
 0xaa0   : > { %2248 = vmatprep.subr.bf16.mxu1 %v3891_v0  ;;  %v2111_v30 = vpop.permute.xlu0 %2110 }
 0xaa1   : > { %v2129_v27 = vpack.c.bf16 %v2109_v29, %v2108_v19  ;;  %v2118_v32 = vmul.f32 %v4490_v22, %v2111_v30 }
 0xaa2   : > { %v2113_v3 = vpop.permute.xlu1 %2112 }
 0xaa3   : > { %2249 = vmatpush1.bf16.msra.mxu1 %v2127_v46  ;;  %v2119_v49 = vmul.f32 %v4490_v22, %v2113_v3 }
 0xaa4   : > { %2250 = vmatprep.subr.bf16.mxu1 %v3891_v0  ;;  %v2115_v23 = vpop.permute.xlu0 %2114 }
 0xaa5   : > { %v2130_v50 = vpack.c.bf16 %v2119_v49, %v2118_v32  ;;  %v2120_v33 = vmul.f32 %v4490_v22, %v2115_v23 }
 0xaa6   : > { %v2117_v31 = vpop.permute.xlu1 %2116 }
 0xaa7   : > { %2251 = vmatpush1.bf16.msra.mxu1 %v2128_v28  ;;  %v2121_v46 = vmul.f32 %v4490_v22, %v2117_v31  ;;  %v3303_v22 = vld [vmem:[#allocation10 + $0xf0] ss:$8 sps:$4 sm:$0xff]  }
 0xaa8   : > { %2252 = vmatprep.subr.bf16.mxu1 %v3891_v0 }
 0xaa9   : > { %v2131_v9 = vpack.c.bf16 %v2121_v46, %v2120_v33 }
 0xaab   : > { %2253 = vmatpush1.bf16.msra.mxu1 %v2129_v27 }
 0xaac   : > { %2254 = vmatprep.subr.bf16.mxu1 %v3891_v0 }
 0xaaf   : > { %2255 = vmatpush1.bf16.msra.mxu1 %v2130_v50 }
 0xab0   : > { %2256 = vmatprep.subr.bf16.mxu1 %v3891_v0  ;;  %v3304_v0 = vld [vmem:[#allocation13 + $0x50] sm:$0xff]  }
 0xab1   : > { %3015 = vmatprep.mubr.msk.bf16.mxu0 %vm937_vm2, %v3304_v0 }
 0xab2   : > { %3016 = vmatmul.mubr.msk.bf16.gmra.mrb[8].mxu0 %vm937_vm2, %v3305_v40 }
 0xab3   : > { %2257 = vmatpush1.bf16.msra.mxu1 %v2131_v9  ;;  %3023 = vmatprep.mubr.msk.bf16.mxu0 %vm937_vm2, %v3306_v41 }
 0xab5   : > { %v2173_v51 = vpop.permute.xlu0 %2172 }
 0xab6   : > { %2271 = vmatmul.mubr.bf16.vlgmr.msra.gmra.mrb[32].mxu1 %v3292_v34 }
 0xab7   : > { %2925 = vmatprep.mubr.msk.bf16.mxu1 %vm937_vm2, %v3295_v35  ;;  %v2178_v56 = vpop.permute.xlu1 %2177 }
 0xab9   : > { %v2183_v62 = vpop.permute.xlu0 %2182 }
 0xabb   : > { %v2188_v63 = vpop.permute.xlu1 %2187 }
 0xabd   : > { %v2153_v8 = vpop.permute.xlu0 %2152 }
 0xabe   : > { %2279 = vmatmul.mubr.bf16.gmra.mrb[36].mxu1 %v3297_v36 }
 0xabf   : > { %2926 = vmatprep.mubr.msk.bf16.mxu1 %vm937_vm2, %v3298_v37  ;;  %v2158_v44 = vpop.permute.xlu1 %2157 }
 0xac1   : > { %v2163_v20 = vpop.permute.xlu0 %2162 }
 0xac3   : > { %v2168_v3 = vpop.permute.xlu1 %2167 }
 0xac5   : > { %v1088_v0 = vpop.permute.xlu0 %1087 }
 0xac6   : > { %2287 = vmatmul.mubr.bf16.gmra.mrb[40].mxu1 %v3300_v38 }
 0xac7   : > { %2927 = vmatprep.mubr.msk.bf16.mxu1 %vm937_vm2, %v3301_v39  ;;  %v1093_v40 = vpop.permute.xlu1 %1092 }
 0xac9   : > { %v1518_v41 = vpop.permute.xlu0 %1517 }
 0xace   : > { %2295 = vmatmul.mubr.bf16.gmra.mrb[44].mxu1 %v3303_v22  ;;  %v3307_v22 = vld [vmem:[#allocation16 + $0x8] sm:$0xff]  }
 0xb89   : > { %v2272_v42 = vpop.f32.mrb[32].mxu1 }
 0xb8a   : > { %v2274_v45 = vpop.f32.mrb[33].mxu1  ;;  %v2273_v10 = vadd.f32 %v2272_v42, %v2153_v8  ;;  %v1523_v42 = vpop.permute.xlu1 %1522 }
 0xb8b   : > { %v2275_v47 = vpop.f32.mrb[34].mxu1  ;;  %v1948_v45 = vpop.permute.xlu0 %1947 }
 0xb8c   : > { %v2277_v48 = vpop.f32.mrb[35].mxu1  ;;  %v2276_v14 = vadd.f32 %v2275_v47, %v2158_v44 }
 0xb8e   : > { %v1953_v47 = vpop.permute.xlu1 %1952 }
 0xb8f   : > { %v1098_v48 = vpop.permute.xlu0 %1097 }
 0xb91   : > { %v2280_v13 = vpop.f32.mrb[36].mxu1 }
 0xb92   : > { %v2282_v6 = vpop.f32.mrb[37].mxu1  ;;  %v2281_v55 = vadd.f32 %v2280_v13, %v2163_v20  ;;  %v1103_v13 = vpop.permute.xlu1 %1102 }
 0xb93   : > { %v2283_v7 = vpop.f32.mrb[38].mxu1  ;;  %v1528_v6 = vpop.permute.xlu0 %1527 }
 0xb94   : > { %v2285_v21 = vpop.f32.mrb[39].mxu1  ;;  %v2284_v29 = vadd.f32 %v2283_v7, %v2168_v3 }
 0xb96   : > { %v1533_v7 = vpop.permute.xlu1 %1532 }
 0xb97   : > { %v2348_v21 = vpop.permute.xlu0 %2347 }
 0xb99   : > { %v2288_v52 = vpop.f32.mrb[40].mxu1 }
 0xb9a   : > { %v2289_v53 = vadd.f32 %v2288_v52, %v2173_v51  ;;  %v2290_v54 = vpop.f32.mrb[41].mxu1  ;;  %v2353_v51 = vpop.permute.xlu1 %2352 }
 0xb9b   : > { %v2291_v57 = vpop.f32.mrb[42].mxu1  ;;  %v1958_v52 = vpop.permute.xlu0 %1957  ;;  %v3043_v54 = vadd.f32 %v1528_v6, %v1098_v48 }
 0xb9c   : > { %v2928_v58 = vmul.f32 -1.442695, %v2289_v53  ;;  %v2292_v59 = vadd.f32 %v2291_v57, %v2178_v56  ;;  %v2293_v60 = vpop.f32.mrb[43].mxu1  ;;  %v3047_v56 = vadd.f32 %v1518_v41, %v1088_v0 }
 0xb9d   : > { %v3055_v60 = vadd.f32 %v1523_v42, %v1093_v40 }
 0xb9e   : > { %3380 = vpow2.f32 %v2928_v58  ;;  %v2929_v61 = vmul.f32 -1.442695, %v2292_v59  ;;  %v1963_v53 = vpop.permute.xlu1 %1962  ;;  %v3051_v58 = vadd.f32 %v1533_v7, %v1103_v13  ;;  %v3044_v59 = vadd.f32 %v3043_v54, %v1958_v52 }
 0xb9f   : > { %v2358_v57 = vpop.permute.xlu0 %2357 }
 0xba0   : > { %3382 = vpow2.f32 %v2929_v61  ;;  %v3048_v61 = vadd.f32 %v3047_v56, %v1948_v45 }
 0xba1   : > { %v2296_v1 = vpop.f32.mrb[44].mxu1 }
 0xba2   : > { %v2297_v2 = vadd.f32 %v2296_v1, %v2183_v62  ;;  %v2298_v4 = vpop.f32.mrb[45].mxu1  ;;  %v2363_v62 = vpop.permute.xlu1 %2362  ;;  %v3045_v1 = vadd.f32 %v3044_v59, %v2358_v57 }
 0xba3   : > { %v2299_v5 = vpop.f32.mrb[46].mxu1  ;;  %v3049_v4 = vadd.f32 %v3048_v61, %v2348_v21 }
 0xba4   : > { %v2930_v24 = vmul.f32 -1.442695, %v2297_v2  ;;  %v2300_v25 = vadd.f32 %v2299_v5, %v2188_v63  ;;  %v2301_v26 = vpop.f32.mrb[47].mxu1  ;;  %v3052_v63 = vadd.f32 %v3051_v58, %v1963_v53  ;;  %v3056_v2 = vadd.f32 %v3055_v60, %v1953_v47 }
 0xba6   : > { %3384 = vpow2.f32 %v2930_v24  ;;  %v2931_v11 = vmul.f32 -1.442695, %v2300_v25  ;;  %v3053_v24 = vadd.f32 %v3052_v63, %v2363_v62  ;;  %v3057_v8 = vadd.f32 %v3056_v2, %v2353_v51 }
 0xba8   : > { %v3381_v12 = vpop.eup %3380  ;;  %3386 = vpow2.f32 %v2931_v11 }
 0xba9   : > { %v2319_v15 = vadd.f32 1.0, %v3381_v12  ;;  %3388 = vtanh.f32 %v2273_v10 }
 0xbaa   : > { %v3383_v16 = vpop.eup %3382 }
 0xbab   : > { %3390 = vrcp.f32 %v2319_v15  ;;  %v2320_v17 = vadd.f32 1.0, %v3383_v16 }
 0xbac   : > { %3392 = vtanh.f32 %v2276_v14 }
 0xbad   : > { %3394 = vrcp.f32 %v2320_v17 }
 0xbae   : > { %3396 = vtanh.f32 %v2281_v55 }
 0xbb0   : > { %v3385_v28 = vpop.eup %3384 }
 0xbb1   : > { %v2321_v30 = vadd.f32 1.0, %v3385_v28  ;;  %v2440_v28 = vld [vmem:[#allocation19] sm:$0xf] }
 0xbb2   : > { %v3387_v19 = vpop.eup %3386 }
 0xbb3   : > { %3398 = vrcp.f32 %v2321_v30  ;;  %v2322_v27 = vadd.f32 1.0, %v3387_v19  ;;  %v3389_v49 = vpop.eup %3388 }
 0xbb4   : > { %3400 = vtanh.f32 %v2284_v29  ;;  %v2492_v29 = vld [vmem:[#allocation19 + $0x4] sm:$0xf] }
 0xbb5   : > { %v3391_v31 = vpop.eup %3390  ;;  %3402 = vrcp.f32 %v2322_v27 }
 0xbb6   : > { %v3393_v32 = vpop.eup %3392  ;;  %v2331_v23 = vmul.f32 %v3391_v31, %v3389_v49  ;;  %v2498_v31 = vpop.permute.xlu0 %2497 }
 0xbb7   : > { %v3395_v50 = vpop.eup %3394 }
 0xbb8   : > { %v2332_v46 = vmul.f32 %v3395_v50, %v3393_v32  ;;  %v3397_v9 = vpop.eup %3396 }
 0xbba   : > { %v2335_v33 = vpack.c.bf16 %v2332_v46, %v2331_v23 }
 0xbbc   : > { %3019 = vmatprep.subr.bf16.mxu0 %v2335_v33 }
 0xbbd   : > { %v3399_v34 = vpop.eup %3398  ;;  %3020 = vmatpush3.bf16.msra.mxu0 %v2335_v33 }
 0xbbe   : > { %v3401_v35 = vpop.eup %3400  ;;  %v2333_v36 = vmul.f32 %v3399_v34, %v3397_v9 }
 0xbbf   : > { %v3403_v37 = vpop.eup %3402 }
 0xbc0   : > { %v2334_v38 = vmul.f32 %v3403_v37, %v3401_v35 }
 0xbc2   : > { %v2336_v39 = vpack.c.bf16 %v2334_v38, %v2333_v36 }
 0xbc4   : > { %3021 = vmatprep.subr.bf16.mxu0 %v2336_v39 }
 0xbc5   : > { %3022 = vmatpush3.bf16.msra.mxu0 %v2336_v39  ;;  %v2445_v39 = vpop.permute.xlu1 %2444 }
 0xbc6   : > { %3027 = vmatprep.subr.bf16.mxu0 %v3896_v43 }
 0xbc8   : > { %3024 = vmatmul.mubr.msk.bf16.vlgmr.msra.gmra.mrb[8].mxu0 %vm937_vm2, %v3307_v22  ;;  %v650_v22 = vld [vmem:[%s4364_s29 + $0x8] sm:$0xff]  ;;  %s3898_s29 = smov [#allocation23]  }
 0xbc9   : > { %3031 = vmatprep.mubr.msk.bf16.mxu0 %vm3897_vm7, %v3896_v43  ;;  %s3751_s21 = sshll.u32 %s3898_s29, 4  ;;  %s3752_s21 = int_to_ptr.vmem [resolvable:$false] %s3751_s21 }
 0xbca   : > { %s3753_s19 = scalar_lea.vmem %s3752_s21, 32  ;;  %p3754_p5 = scmp.lt.s32.totalorder %s4795_s12, %s3752_s21 }
 0xbcb   : > { %p3755_p10 = scmp.lt.s32.totalorder %s3753_s19, %s3747_s20 }
 0xbcd   : > { %p3756_p1 = por %p3755_p10, %p3754_p5 }
 0xbcf   : > { %p3757_p11 = pnand %p3756_p1, %p3750_p8 }
 0xc9b   : > { %v3025_v5 = vpop.f32.mrb[8].mxu0 }
 0xc9c   : > { %v3046_v25 = vadd.f32 %v3045_v1, %v3025_v5  ;;  %v2415_v26 = vpop.f32.mrb[9].mxu0 }
 0xc9d   : > { %v3050_v10 = vadd.f32 %v3049_v4, %v2415_v26  ;;  %v3026_v11 = vpop.f32.mrb[10].mxu0 }
 0xc9e   : > { %v3054_v44 = vadd.f32 %v3053_v24, %v3026_v11  ;;  %v2418_v12 = vpop.f32.mrb[11].mxu0  ;;  %v2436_v15 = vmul.f32 %v4682_v18, %v3046_v25 }
 0xc9f   : > { %v3058_v14 = vadd.f32 %v3057_v8, %v2418_v12  ;;  %v2434_v17 = vmul.f32 %v4682_v18, %v3050_v10 }
 0xca0   : > { %v2437_v16 = vmul.f32 %v4682_v18, %v3054_v44 }
 0xca1   : > { %v2435_v20 = vmul.f32 %v4682_v18, %v3058_v14 }
 0xca2   : > { %v2439_v55 = vpack.c.bf16 %v2437_v16, %v2436_v15 }
 0xca3   : > { %v2438_v3 = vpack.c.bf16 %v2435_v20, %v2434_v17 }
 0xca5   : > { %3028 = vmatpush3.bf16.msra.mxu0 %v2438_v3 }
 0xca6   : > { %3029 = vmatprep.subr.bf16.mxu0 %v3896_v43 }
 0xca9   : > { %3030 = vmatpush3.bf16.msra.mxu0 %v2439_v55 }
 0xcaa   : > { %3035 = vmatprep.subr.bf16.mxu0 %v3896_v43 }
 0xcac   : > { %3032 = vmatmul.mubr.msk.bf16.vlgmr.msra.gmra.mrb[36].mxu0 %vm937_vm2, %v2440_v28 }
 0xcad   : > { %3036 = vmatpush3.bf16.msra.mxu0 %v2438_v3  ;;  %3039 = vmatprep.mubr.msk.bf16.mxu0 %vm3897_vm7, %v3896_v43 }
 0xcae   : > { %3037 = vmatprep.subr.bf16.mxu0 %v3896_v43 }
 0xcb1   : > { %3038 = vmatpush3.bf16.msra.mxu0 %v2439_v55 }
 0xcb4   : > { %3040 = vmatmul.mubr.msk.bf16.vlgmr.msra.gmra.mrb[40].mxu0 %vm937_vm2, %v2492_v29 }
 0xd7f   : > { %v2484_v30 = vpop.f32.mrb[36].mxu0 }
 0xd80   : > { %v3033_v19 = vpop.f32.mrb[37].mxu0  ;;  %v2485_v40 = vadd.f32 %v2484_v30, %v2445_v39 }
 0xd81   : > { %v2487_v27 = vpop.f32.mrb[38].mxu0 }
 0xd82   : > { %v3034_v49 = vpop.f32.mrb[39].mxu0 }
 0xd87   : > { %v2537_v32 = vpop.f32.mrb[40].mxu0 }
 0xd88   : > { %v2538_v23 = vadd.f32 %v2537_v32, %v2498_v31  ;;  %v3041_v50 = vpop.f32.mrb[41].mxu0 }
 0xd89   : > { %v2540_v46 = vpop.f32.mrb[42].mxu0 }
 0xd8a   : > { %v2543_v33 = vmul.f32 %v4682_v18, %v2538_v23  ;;  %v3042_v9 = vpop.f32.mrb[43].mxu0 }
 0xd8c   : > { %v2544_v43 = vmul.f32 1.442695, %v2543_v33  ;;  %v2551_v34 = vrot.slane %v2543_v33, 4 }
 0xd8e   : > { %3404 = vpow2.f32 %v2544_v43  ;;  %v2552_v35 = vadd.f32 %v2551_v34, %v2543_v33 }
 0xd90   : > { %v2553_v36 = vrot.slane %v2552_v35, 2 }
 0xd92   : > { %v2554_v37 = vadd.f32 %v2553_v36, %v2552_v35 }
 0xd94   : > { %v2555_v38 = vrot.slane %v2554_v37, 1 }
 0xd96   : > { %v2556_v0 = vadd.f32 %v2555_v38, %v2554_v37 }
 0xd98   : > { %v3405_v41 = vpop.eup %3404  ;;  %2557 = vst [vmem:[%s647_s13] sm:$0x1] %v2556_v0 }
 0xd99   : > { %v2546_v42 = vmul.f32 %v3405_v41, %v650_v22 }
 0xd9a   : > { %3760 = shalt.err (!%p3757_p11)
}
 0xd9b   : > { %s3761_s15 = scalar_lea.hbm %s4793_s5, 16  ;;  %s3765_s22 = scalar_lea.hbm %s4958_s17, 32 }
 0xd9c   : > { %p3762_p12 = scmp.ne.s32.totalorder %s4793_s5, %s3761_s15  ;;  %p3766_p9 = scmp.lt.u32.totalorder %s4793_s5, %s4958_s17 }
 0xd9d   : > { %p3767_p0 = scmp.lt.u32.totalorder %s3765_s22, %s3761_s15  ;;  %p3769_p3 = scmp.lt.u32.totalorder %s3761_s15, %s4793_s5 }
 0xd9e   : > { %p3763_p13 = pnand %p3762_p12, %p4959_p6 }
 0xd9f   : > { %p3768_p2 = por %p3767_p0, %p3766_p9 }
 0xda0   : > { %p3764_p7 = pneg %p3763_p13 }
 0xda1   : > { %p3770_p4 = por %p3769_p3, %p3768_p2 }
 0xda3   : > { %p3771_p8 = pnand %p3770_p4, %p3764_p7 }
 0xda5   : > { %3774 = shalt.err (!%p3771_p8)
}
 0xda6   : > { %3117 = dma.vmem_to_hbm [thread:$0]  (%p4959_p6), %s4795_s12, 16, %s4793_s5, %s2564_s4   ;;  %v2490_v45 = vmul.f32 %v4682_v18, %v2485_v40  ;;  %v2547_v47 = vmul.f32 %v4682_v18, %v2546_v42 }
 0xda7   : > { %s4960_s19 = sld [smem:[#allocation45_spill]]  ;;  %s2559_s6 = scalar_lea.sflag [#allocation4], %s4360_s18 }
 0xda8   : > { %v2548_v48 = vadd.f32 %v2547_v47, %v2490_v45  ;;  %s3775_s12 = scalar_lea.vmem %s4823_s3, 256  ;;  %s3899_s5 = smov [#allocation22]  }
 0xda9   : > { %p3776_p5 = scmp.ne.s32.totalorder %s4823_s3, %s3775_s12  ;;  %s3779_s4 = sshll.u32 %s3899_s5, 4  ;;  %s3780_s4 = int_to_ptr.vmem [resolvable:$false] %s3779_s4 }
 0xdaa   : > { %2550 = vst [vmem:[%s4404_s0 + $0x8] sm:$0xff] %v2548_v48  ;;  %s3781_s13 = scalar_lea.vmem %s3780_s4, 512  ;;  %p3782_p11 = scmp.lt.s32.totalorder %s4823_s3, %s3780_s4 }
 0xdab   : > { %p3777_p10 = pnand %p3776_p5, %p4959_p6  ;;  %p3783_p12 = scmp.lt.s32.totalorder %s3781_s13, %s3775_s12 }
 0xdad   : > { %s4832_s15 = scalar_lea.hbm %s4960_s19, %s2945_s7  ;;  %p3778_p1 = pneg %p3777_p10 }
 0xdae   : > { %p3784_p13 = por %p3783_p12, %p3782_p11 }
 0xdb0   : > { %p3785_p7 = pnand %p3784_p13, %p3778_p1 }
 0xdb2   : > { %3788 = shalt.err (!%p3785_p7)
}
 0xdb3   : > { %s3789_s14 = scalar_lea.hbm %s4832_s15, 256  ;;  %s3793_s22 = scalar_lea.hbm %s4960_s19, 512 }
 0xdb4   : > { %p3790_p9 = scmp.ne.s32.totalorder %s4832_s15, %s3789_s14  ;;  %p3794_p3 = scmp.lt.u32.totalorder %s4832_s15, %s4960_s19 }
 0xdb5   : > { %p3795_p4 = scmp.lt.u32.totalorder %s3793_s22, %s3789_s14  ;;  %p3797_p5 = scmp.lt.u32.totalorder %s3789_s14, %s4832_s15 }
 0xdb6   : > { %p3791_p0 = pnand %p3790_p9, %p4959_p6 }
 0xdb7   : > { %p3796_p8 = por %p3795_p4, %p3794_p3 }
 0xdb8   : > { %p3792_p2 = pneg %p3791_p0 }
 0xdb9   : > { %p3798_p10 = por %p3797_p5, %p3796_p8 }
 0xdbb   : > { %p3799_p1 = pnand %p3798_p10, %p3792_p2 }
 0xdbd   : > { %3802 = shalt.err (!%p3799_p1)
}
 0xdbe   : > { %s3900_s20 = smov 128   ;;  %s3901_s21 = smov 8  }
 0xdbf   : > { %3116 = dma.vmem_to_hbm [thread:$0]  (%p4959_p6), %s4823_s3, 256, %s4832_s15, %s2559_s6, %s3900_s20, %s3900_s20, %s3901_s21  }
 0xdc0 PF: > { %s2604_s12 = sand.u32 1, %s3861_s25   ;;  %p4961_p11 = scmp.ne.s32.totalorder %s4938_s1, 0 }
 0xdc1   : > { %p4962_p12 = scmp.ge.s32.totalorder %s3873_s28, 2  ;;  %s2605_s5 = scalar_lea.sflag [#allocation4], %s2604_s12 }
 0xdc3   : > { %p3159_p13 = pnand %p4962_p12, %p4961_p11 }
 0xdc5   : > { %3852 = dma.done.wait (!%p3159_p13), %s2605_s5, 256  }
 0xdc6   : > { %3854 = vsyncadd (!%p3159_p13), %s2605_s5, 4294967040  ;;  %s2614_s4 = scalar_lea.sflag [#allocation24], %s2604_s12 }
 0xdc7   : > { %3856 = dma.done.wait (!%p3159_p13), %s2614_s4, 16  }
 0xdc8   : > { %3858 = vsyncadd (!%p3159_p13), %s2614_s4, 4294967280  ;;  %p38_p6 = scmp.ge.s32.totalorder %s4246_s16, 4   ;;  %s4963_s25 = smov %s3865_s26 }
 0xdc9   : > { %s4964_s26 = smov %s3869_s27  ;;  %s4965_s27 = smov %s4257_s2 }
 0xdca   : > { %s4966_s28 = smov %s4246_s16  ;;  %40 = sbr.rel (!%p38_p6) target bundleno = 26 (0x1a), region = 195 }
 0xdd1   :  { %2618 = vsyncpa [#allocation3], 1 }
 0xdd2   :  { %2620 = vsyncpa [#allocation3 + $0x1], 1 }
 0xdd3   :  { %2621 = vsyncpa [#allocation6], 1 }
 0xdd4   :  { %2623 = vsyncpa [#allocation6 + $0x1], 1 }
 0xdd5   :  { %2624 = vsyncpa [#allocation9], 1 }
 0xdd6   :  { %2625 = vsyncpa [#allocation12], 1 }
 0xdd7   :  { %2626 = vsyncpa [#allocation15], 1 }
 0xdd8   :  { %2627 = vsyncpa [#allocation18], 1 }
 0xdd9   :  { %2628 = vsyncpa [#allocation21], 1 }
 0xdda   :  { %2629 = vsyncpa [#allocation4], 1 }
 0xddb   :  { %2631 = vsyncpa [#allocation4 + $0x1], 1 }
 0xddc   :  { %2632 = vsyncpa [#allocation24], 1 }
 0xddd   :  { %2634 = vsyncpa [#allocation24 + $0x1], 1 }

</bundles_post_ra>
